<compile_context>
chip_gen: v7x
topology: tpu7x:2x2x1
jax: 0.10.0
libtpu: 0.0.40
codegen_flags: <defaults>
</compile_context>

<pallas_src>
import math

import jax
import jax.numpy as jnp
from jax.experimental import pallas as pl
from jax.experimental.pallas import tpu as pltpu

# Small, forward-consistent hyperparameters.
INPUT_SIZE = 72      # must be >= 70 because fc_b = Linear(input_size - 69, input_size)
HIDDEN_SIZE = 32     # divisible by 8 (fc_2 halves it three times)
NUM_LAYERS = 2
OUTPUT_SIZE = 4
BATCH = 2            # wrapper pads to a multiple of 8 internally
SEQ = 4              # time steps in x; the LSTM sees SEQ + 1 after the concat

_IN = INPUT_SIZE
_H = HIDDEN_SIZE
_GATE = 4 * _H               # 128: packed gate width, gate order [i|f|o|g]
_KI = 11 * _IN               # fc_1-fused layer-0 input width


def _align8(n):
    return (n + 7) // 8 * 8


# Row offsets of each operand inside the packed f32 weight slab.  Every segment
# starts on an 8-row boundary; every row is 128 lanes wide (zero padded).
R_WCOMB = 0                                   # (11*IN, 4H)   fc_1 (x) wih0
R_WBCOMB = R_WCOMB + _KI                      # (IN-69, 4H)   wb.T @ wih0
R_WHH0 = R_WBCOMB + _align8(_IN - 69)         # (H, 4H)
R_WIH1 = R_WHH0 + _H                          # (H, 4H)
R_WHH1 = R_WIH1 + _H                          # (H, 4H)
R_BIAS = R_WHH1 + _H                          # 8 bias rows (see kernel)
R_W21 = R_BIAS + 8                            # (H, H/2)
R_W22 = R_W21 + _H                            # (H/2, H/4)    BN folded in
R_W23 = R_W22 + _align8(_H // 2)              # (H/4, H/8)
R_W24 = R_W23 + _align8(_H // 4)              # (H/8, OUT)
SLAB_ROWS = R_W24 + _align8(_H // 8)          # 968 rows -> ~484 KiB


def _leaky_relu(x):
    return jnp.where(x > 0, x, 0.01 * x)


def lstm_model_kernel(x_ref, x2023_ref, slab_ref, out_ref):
    """x_ref: (T*B, 11*IN) timestep-major rows; x2023_ref: (B, IN-69);
    slab_ref: (SLAB_ROWS, 4H) packed weights; out_ref: (B, OUT)."""
    f32 = jnp.float32
    bf16 = jnp.bfloat16
    H = HIDDEN_SIZE
    H2, H4, H8 = H // 2, H // 4, H // 8
    B = x2023_ref.shape[0]
    KI = x_ref.shape[1]
    T = x_ref.shape[0] // B
    S = T + 1

    # ---- Hoisted layer-0 input projection, fc_1 / fc_b already fused in.
    # One tall MXU matmul for the T fc_1-derived steps + one tiny one for the
    # fc_b-derived final step.  Everything stays a value (no scratch).
    w_comb = slab_ref[R_WCOMB:R_WCOMB + KI, :].astype(bf16)
    gx_main = (jnp.dot(x_ref[...].astype(bf16), w_comb,
                       preferred_element_type=f32)
               + slab_ref[R_BIAS + 0:R_BIAS + 1, :])            # (T*B, 4H)
    wb_comb = slab_ref[R_WBCOMB:R_WBCOMB + x2023_ref.shape[1], :].astype(bf16)
    gx_last = (jnp.dot(x2023_ref[...].astype(bf16), wb_comb,
                       preferred_element_type=f32)
               + slab_ref[R_BIAS + 1:R_BIAS + 2, :])            # (B, 4H)

    # Recurrent weights: loaded + cast to bf16 once, outside the loop.
    whh0 = slab_ref[R_WHH0:R_WHH0 + H, :].astype(bf16)
    wih1 = slab_ref[R_WIH1:R_WIH1 + H, :].astype(bf16)
    whh1 = slab_ref[R_WHH1:R_WHH1 + H, :].astype(bf16)
    bl1 = slab_ref[R_BIAS + 2:R_BIAS + 3, :]

    def cell(gates, c):
        # gates: (B, 4H) with gate blocks [i | f | o | g] on the 128-lane axis.
        # One sigmoid + one tanh EUP pass over the full 128 lanes; each 32-lane
        # gate extraction below lowers to a single lane-rotate (same vrot an
        # explicit pltpu.roll would emit) and overlaps the other layer's MXU.
        sg = jax.nn.sigmoid(gates)
        tg = jnp.tanh(gates)
        i_g = sg[:, 0:H]
        f_g = sg[:, H:2 * H]
        o_g = sg[:, 2 * H:3 * H]
        g_g = tg[:, 3 * H:4 * H]
        c_new = f_g * c + i_g * g_g
        h_new = o_g * jnp.tanh(c_new)
        return h_new, c_new

    zf = jnp.zeros((B, H), f32)
    zb = jnp.zeros((B, H), bf16)
    h1, c0, c1 = zf, zf, zf
    h0b, h1b = zb, zb

    # ---- Interleaved 2-layer recurrence, statically unrolled.  Layer-1 step t
    # has no dependence on layer-0 step t+1, so the scheduler overlaps them:
    # serial chain ~ (S+1) cell latencies instead of 2S.
    for t in range(S):
        gx_t = gx_main[t * B:(t + 1) * B, :] if t < T else gx_last
        g0 = gx_t + jnp.dot(h0b, whh0, preferred_element_type=f32)
        h0, c0 = cell(g0, c0)
        h0b = h0.astype(bf16)
        # Two separate matmuls on purpose: the h1@whh1 push only depends on
        # h1_{t-1} and can be issued before h0_t is ready.
        g1 = (bl1
              + jnp.dot(h0b, wih1, preferred_element_type=f32)
              + jnp.dot(h1b, whh1, preferred_element_type=f32))
        h1, c1 = cell(g1, c1)
        h1b = h1.astype(bf16)

    # ---- fc_2 head (BatchNorm folded into w22/b22; Dropout p=0 is identity).
    w21 = slab_ref[R_W21:R_W21 + H, 0:H2]
    b21 = slab_ref[R_BIAS + 3:R_BIAS + 4, 0:H2]
    w22 = slab_ref[R_W22:R_W22 + H2, 0:H4]
    b22 = slab_ref[R_BIAS + 4:R_BIAS + 5, 0:H4]
    w23 = slab_ref[R_W23:R_W23 + H4, 0:H8]
    b23 = slab_ref[R_BIAS + 5:R_BIAS + 6, 0:H8]
    w24 = slab_ref[R_W24:R_W24 + H8, 0:OUTPUT_SIZE]
    b24 = slab_ref[R_BIAS + 6:R_BIAS + 7, 0:OUTPUT_SIZE]

    y = _leaky_relu(jnp.dot(h1, w21, preferred_element_type=f32) + b21)
    y = _leaky_relu(jnp.dot(y, w22, preferred_element_type=f32) + b22)
    y = _leaky_relu(jnp.dot(y, w23, preferred_element_type=f32) + b23)
    y = jnp.dot(y, w24, preferred_element_type=f32) + b24
    out_ref[...] = y


# --------------------------------------------------------------------------
# Parameters (PyTorch layout) + one-time packing into the weight slab.
# --------------------------------------------------------------------------
def init_params(key):
    """PyTorch-layout params, uniform(-1/sqrt(fan_in), 1/sqrt(fan_in)) init."""
    H, In = HIDDEN_SIZE, INPUT_SIZE
    keys = iter(jax.random.split(key, 24))

    def u(shape, fan_in):
        bound = 1.0 / math.sqrt(fan_in)
        return jax.random.uniform(next(keys), shape, jnp.float32, -bound, bound)

    p = {}
    p["w_fc1"] = u((1, 11), 11)                 # fc_1 = Linear(11, 1)
    p["b_fc1"] = u((1,), 11)
    p["wb"] = u((In, In - 69), In - 69)         # fc_b = Linear(In-69, In)
    p["bb"] = u((In,), In - 69)
    p["wih0"] = u((4 * H, In), H)               # LSTM layer 0 (rows: i,f,g,o)
    p["whh0"] = u((4 * H, H), H)
    p["bih0"] = u((4 * H,), H)
    p["bhh0"] = u((4 * H,), H)
    p["wih1"] = u((4 * H, H), H)                # LSTM layer 1
    p["whh1"] = u((4 * H, H), H)
    p["bih1"] = u((4 * H,), H)
    p["bhh1"] = u((4 * H,), H)
    p["w21"] = u((H // 2, H), H)                # fc_2
    p["b21"] = u((H // 2,), H)
    p["bn_g"] = jnp.ones((H // 2,), jnp.float32)
    p["bn_b"] = jnp.zeros((H // 2,), jnp.float32)
    p["bn_m"] = jnp.zeros((H // 2,), jnp.float32)
    p["bn_v"] = jnp.ones((H // 2,), jnp.float32)
    p["w22"] = u((H // 4, H // 2), H // 2)
    p["b22"] = u((H // 4,), H // 2)
    p["w23"] = u((H // 8, H // 4), H // 4)
    p["b23"] = u((H // 8,), H // 4)
    p["w24"] = u((OUTPUT_SIZE, H // 8), H // 8)
    p["b24"] = u((OUTPUT_SIZE,), H // 8)
    return p


def pack_params(p):
    """One-time repack (outside jit): gate permutation [i,f,g,o]->[i,f,o,g],
    fc_1 / fc_b fused into the layer-0 input projection, eval-mode BatchNorm
    folded into w22/b22, everything placed into one (SLAB_ROWS, 4H) f32 slab."""
    H, In = HIDDEN_SIZE, INPUT_SIZE
    hi = jax.lax.Precision.HIGHEST

    def perm(w):  # permute gate blocks along axis 0 (weights & biases)
        i, f, g, o = jnp.split(w, 4, axis=0)
        return jnp.concatenate([i, f, o, g], axis=0)

    wfc1 = p["w_fc1"].reshape(11)
    bfc1 = p["b_fc1"].reshape(())
    wih0_T = perm(p["wih0"]).T                  # (In, 4H), cols [i,f,o,g]
    whh0_T = perm(p["whh0"]).T                  # (H, 4H)
    bl0 = perm(p["bih0"] + p["bhh0"])           # (4H,)
    wih1_T = perm(p["wih1"]).T
    whh1_T = perm(p["whh1"]).T
    bl1 = perm(p["bih1"] + p["bhh1"])

    # fc_1 folded into layer-0 W_ih: W_comb[k*In+i, :] = wfc1[k] * wih0_T[i, :]
    w_comb = (wfc1[:, None, None] * wih0_T[None, :, :]).reshape(11 * In, 4 * H)
    bias_main = bl0 + bfc1 * jnp.sum(wih0_T, axis=0)

    # fc_b folded into layer-0 W_ih for the final (concatenated) timestep.
    wb_comb = jnp.dot(p["wb"].T, wih0_T, precision=hi)          # (In-69, 4H)
    bias_last = jnp.dot(p["bb"], wih0_T, precision=hi) + bl0    # (4H,)

    # Eval-mode BatchNorm folded into the second head linear.
    s = p["bn_g"] / jnp.sqrt(p["bn_v"] + 1e-5)
    t = p["bn_b"] - p["bn_m"] * s
    w22_T = p["w22"].T * s[:, None]                             # (H/2, H/4)
    b22 = p["b22"] + jnp.dot(t, p["w22"].T, precision=hi)       # (H/4,)

    slab = jnp.zeros((SLAB_ROWS, 4 * H), jnp.float32)

    def put(sl, r0, a):
        a = jnp.asarray(a, jnp.float32)
        if a.ndim == 1:
            a = a[None, :]
        return sl.at[r0:r0 + a.shape[0], 0:a.shape[1]].set(a)

    slab = put(slab, R_WCOMB, w_comb)
    slab = put(slab, R_WBCOMB, wb_comb)
    slab = put(slab, R_WHH0, whh0_T)
    slab = put(slab, R_WIH1, wih1_T)
    slab = put(slab, R_WHH1, whh1_T)
    slab = put(slab, R_BIAS + 0, bias_main)
    slab = put(slab, R_BIAS + 1, bias_last)
    slab = put(slab, R_BIAS + 2, bl1)
    slab = put(slab, R_BIAS + 3, p["b21"])
    slab = put(slab, R_BIAS + 4, b22)
    slab = put(slab, R_BIAS + 5, p["b23"])
    slab = put(slab, R_BIAS + 6, p["b24"])
    slab = put(slab, R_W21, p["w21"].T)
    slab = put(slab, R_W22, w22_T)
    slab = put(slab, R_W23, p["w23"].T)
    slab = put(slab, R_W24, p["w24"].T)
    return slab


def lstm_model_forward(x, x_2023, slab):
    """x: (B, T, INPUT_SIZE, 11) torch layout; x_2023: (B, INPUT_SIZE-69)."""
    B, T, In, K = x.shape
    # Pad batch to a multiple of 8: full f32 sublane occupancy, 8-aligned
    # per-step gx slices, unmasked stores.  Padded rows are sliced off below.
    Bp = _align8(B)
    if Bp != B:
        x = jnp.pad(x, ((0, Bp - B), (0, 0), (0, 0), (0, 0)))
        x_2023 = jnp.pad(x_2023, ((0, Bp - B), (0, 0)))

    # (B,T,In,11) -> (T,B,11,In) -> (T*Bp, 11*In): column index = k*In + i,
    # matching W_comb's packing; the hoisted projection is one tall matmul.
    x_kern = jnp.transpose(x, (1, 0, 3, 2)).reshape(T * Bp, K * In)

    vmem = pl.BlockSpec(memory_space=pltpu.MemorySpace.VMEM)

    # Single gridless invocation: footprint << VMEM on v5e/v6e/v7x and the
    # kernel is latency-bound, so grid-step overhead would only hurt.
    # TODO(synk): for large-batch serving on v7x, add a leading batch grid axis
    # with dimension_semantics=("parallel",) to shard across its 2 TensorCores.
    out = pl.pallas_call(
        lstm_model_kernel,
        out_shape=jax.ShapeDtypeStruct((Bp, OUTPUT_SIZE), jnp.float32),
        in_specs=[vmem, vmem, vmem],
        out_specs=vmem,
    )(x_kern, x_2023, slab)
    return out[:B]


# --------------------------------------------------------------------------
# Pure-JAX reference (mirrors the PyTorch module) for a correctness check.
# --------------------------------------------------------------------------
def reference_forward(x, x_2023, p):
    H = HIDDEN_SIZE
    out = jnp.einsum("btik,ok->btio", x, p["w_fc1"]) + p["b_fc1"]
    out = out[..., 0]                                        # (B, T, In)
    xb = x_2023 @ p["wb"].T + p["bb"]                        # (B, In)
    seq = jnp.concatenate([out, xb[:, None, :]], axis=1)     # (B, S, In)

    def lstm_layer(seq, wih, whh, bih, bhh):
        def step(carry, x_t):
            h, c = carry
            gates = x_t @ wih.T + bih + h @ whh.T + bhh
            i = jax.nn.sigmoid(gates[:, 0:H])
            f = jax.nn.sigmoid(gates[:, H:2 * H])
            g = jnp.tanh(gates[:, 2 * H:3 * H])
            o = jax.nn.sigmoid(gates[:, 3 * H:4 * H])
            c = f * c + i * g
            h = o * jnp.tanh(c)
            return (h, c), h

        h0 = jnp.zeros((seq.shape[0], H), jnp.float32)
        _, hs = jax.lax.scan(step, (h0, h0), jnp.swapaxes(seq, 0, 1))
        return jnp.swapaxes(hs, 0, 1)                        # (B, S, H)

    seq = lstm_layer(seq, p["wih0"], p["whh0"], p["bih0"], p["bhh0"])
    seq = lstm_layer(seq, p["wih1"], p["whh1"], p["bih1"], p["bhh1"])
    h = seq[:, -1]
    z = h @ p["w21"].T + p["b21"]
    z = jnp.where(z > 0, z, 0.01 * z)
    z = (z - p["bn_m"]) * (p["bn_g"] / jnp.sqrt(p["bn_v"] + 1e-5)) + p["bn_b"]
    z = z @ p["w22"].T + p["b22"]
    z = jnp.where(z > 0, z, 0.01 * z)
    z = z @ p["w23"].T + p["b23"]
    z = jnp.where(z > 0, z, 0.01 * z)
    z = z @ p["w24"].T + p["b24"]
    return z


if __name__ == "__main__":
    key = jax.random.PRNGKey(0)
    kx, kx2, kp = jax.random.split(key, 3)

    x = jax.random.normal(kx, (BATCH, SEQ, INPUT_SIZE, 11), jnp.float32)
    x_2023 = jax.random.normal(kx2, (BATCH, INPUT_SIZE - 69), jnp.float32)
    params = init_params(kp)
    slab = pack_params(params)       # one-time weight repack, outside jit

    fwd = jax.jit(lambda a, b: lstm_model_forward(a, b, slab))
    out = jax.block_until_ready(fwd(x, x_2023))

    assert out.shape == (BATCH, OUTPUT_SIZE), out.shape
    assert bool(jnp.all(jnp.isfinite(out)))

    # Cross-check against the pure-JAX reference (full f32 matmul precision).
    # The kernel runs its matmuls with bf16 operands / f32 accumulation, so the
    # tolerance is set accordingly.
    with jax.default_matmul_precision("float32"):
        ref = jax.block_until_ready(
            jax.jit(lambda a, b: reference_forward(a, b, params))(x, x_2023))
    assert bool(jnp.allclose(out, ref, atol=2e-2, rtol=2e-2)), (out, ref)

    print("KERNEL_OK")
</pallas_src>

<mosaic_0001>
module attributes {stable_mosaic.version = 11 : i64} {
  func.func @lstm_model_kernel(%arg0: memref<32x792xf32, #tpu.memory_space<vmem>>, %arg1: memref<8x3xf32, #tpu.memory_space<vmem>>, %arg2: memref<968x128xf32, #tpu.memory_space<vmem>>, %arg3: memref<8x4xf32, #tpu.memory_space<vmem>>) attributes {dimension_semantics = [], scalar_prefetch = 0 : i64, scratch_operands = 0 : i64, tpu.core_type = #tpu.core_type<tc>} {
    %c0 = arith.constant 0 : index
    %c0_0 = arith.constant 0 : index
    %0 = vector.load %arg2[%c0, %c0_0] : memref<968x128xf32, #tpu.memory_space<vmem>>, vector<792x128xf32>
    %1 = arith.truncf %0 : vector<792x128xf32> to vector<792x128xbf16>
    %c0_1 = arith.constant 0 : index
    %c0_2 = arith.constant 0 : index
    %2 = vector.load %arg0[%c0_1, %c0_2] : memref<32x792xf32, #tpu.memory_space<vmem>>, vector<32x792xf32>
    %3 = arith.truncf %2 : vector<32x792xf32> to vector<32x792xbf16>
    %cst = arith.constant dense<0.000000e+00> : vector<32x128xf32>
    %4 = tpu.matmul %3, %1, %cst {dimension_numbers = #tpu.dot_dimension_numbers<[1], [0], [0], [1], [0, 0, 1, 1], [], []>} : vector<32x792xbf16>, vector<792x128xbf16>, vector<32x128xf32> -> vector<32x128xf32>
    %c896 = arith.constant 896 : index
    %c0_3 = arith.constant 0 : index
    %5 = vector.load %arg2[%c896, %c0_3] : memref<968x128xf32, #tpu.memory_space<vmem>>, vector<1x128xf32>
    %6 = vector.broadcast %5 : vector<1x128xf32> to vector<32x128xf32>
    %7 = arith.addf %4, %6 : vector<32x128xf32>
    %c792 = arith.constant 792 : index
    %c0_4 = arith.constant 0 : index
    %8 = vector.load %arg2[%c792, %c0_4] : memref<968x128xf32, #tpu.memory_space<vmem>>, vector<3x128xf32>
    %9 = arith.truncf %8 : vector<3x128xf32> to vector<3x128xbf16>
    %c0_5 = arith.constant 0 : index
    %c0_6 = arith.constant 0 : index
    %10 = vector.load %arg1[%c0_5, %c0_6] : memref<8x3xf32, #tpu.memory_space<vmem>>, vector<8x3xf32>
    %11 = arith.truncf %10 : vector<8x3xf32> to vector<8x3xbf16>
    %cst_7 = arith.constant dense<0.000000e+00> : vector<8x128xf32>
    %12 = tpu.matmul %11, %9, %cst_7 {dimension_numbers = #tpu.dot_dimension_numbers<[1], [0], [0], [1], [0, 0, 1, 1], [], []>} : vector<8x3xbf16>, vector<3x128xbf16>, vector<8x128xf32> -> vector<8x128xf32>
    %c897 = arith.constant 897 : index
    %c0_8 = arith.constant 0 : index
    %13 = vector.load %arg2[%c897, %c0_8] : memref<968x128xf32, #tpu.memory_space<vmem>>, vector<1x128xf32>
    %14 = vector.broadcast %13 : vector<1x128xf32> to vector<8x128xf32>
    %15 = arith.addf %12, %14 : vector<8x128xf32>
    %c800 = arith.constant 800 : index
    %c0_9 = arith.constant 0 : index
    %16 = vector.load %arg2[%c800, %c0_9] : memref<968x128xf32, #tpu.memory_space<vmem>>, vector<32x128xf32>
    %17 = arith.truncf %16 : vector<32x128xf32> to vector<32x128xbf16>
    %c832 = arith.constant 832 : index
    %c0_10 = arith.constant 0 : index
    %18 = vector.load %arg2[%c832, %c0_10] : memref<968x128xf32, #tpu.memory_space<vmem>>, vector<32x128xf32>
    %19 = arith.truncf %18 : vector<32x128xf32> to vector<32x128xbf16>
    %c864 = arith.constant 864 : index
    %c0_11 = arith.constant 0 : index
    %20 = vector.load %arg2[%c864, %c0_11] : memref<968x128xf32, #tpu.memory_space<vmem>>, vector<32x128xf32>
    %21 = arith.truncf %20 : vector<32x128xf32> to vector<32x128xbf16>
    %c898 = arith.constant 898 : index
    %c0_12 = arith.constant 0 : index
    %22 = vector.load %arg2[%c898, %c0_12] : memref<968x128xf32, #tpu.memory_space<vmem>>, vector<1x128xf32>
    %cst_13 = arith.constant 0.000000e+00 : f32
    %23 = vector.broadcast %cst_13 : f32 to vector<8x32xf32>
    %cst_14 = arith.constant 0.000000e+00 : bf16
    %24 = vector.broadcast %cst_14 : bf16 to vector<8x32xbf16>
    %25 = vector.extract_strided_slice %7 {offsets = [0, 0], sizes = [8, 128], strides = [1, 1]} : vector<32x128xf32> to vector<8x128xf32>
    %cst_15 = arith.constant dense<0.000000e+00> : vector<8x128xf32>
    %26 = tpu.matmul %24, %17, %cst_15 {dimension_numbers = #tpu.dot_dimension_numbers<[1], [0], [0], [1], [0, 0, 1, 1], [], []>} : vector<8x32xbf16>, vector<32x128xbf16>, vector<8x128xf32> -> vector<8x128xf32>
    %27 = arith.addf %25, %26 : vector<8x128xf32>
    %28 = arith.negf %27 : vector<8x128xf32>
    %29 = math.exp %28 : vector<8x128xf32>
    %cst_16 = arith.constant 1.000000e+00 : f32
    %30 = vector.broadcast %cst_16 : f32 to vector<8x128xf32>
    %31 = arith.addf %30, %29 : vector<8x128xf32>
    %32 = arith.divf %30, %31 : vector<8x128xf32>
    %33 = math.tanh %27 : vector<8x128xf32>
    %34 = vector.extract_strided_slice %32 {offsets = [0, 0], sizes = [8, 32], strides = [1, 1]} : vector<8x128xf32> to vector<8x32xf32>
    %35 = vector.extract_strided_slice %32 {offsets = [0, 32], sizes = [8, 32], strides = [1, 1]} : vector<8x128xf32> to vector<8x32xf32>
    %36 = vector.extract_strided_slice %32 {offsets = [0, 64], sizes = [8, 32], strides = [1, 1]} : vector<8x128xf32> to vector<8x32xf32>
    %37 = vector.extract_strided_slice %33 {offsets = [0, 96], sizes = [8, 32], strides = [1, 1]} : vector<8x128xf32> to vector<8x32xf32>
    %38 = arith.mulf %35, %23 : vector<8x32xf32>
    %39 = arith.mulf %34, %37 : vector<8x32xf32>
    %40 = arith.addf %38, %39 : vector<8x32xf32>
    %41 = math.tanh %40 : vector<8x32xf32>
    %42 = arith.mulf %36, %41 : vector<8x32xf32>
    %43 = arith.truncf %42 : vector<8x32xf32> to vector<8x32xbf16>
    %cst_17 = arith.constant dense<0.000000e+00> : vector<8x128xf32>
    %44 = tpu.matmul %43, %19, %cst_17 {dimension_numbers = #tpu.dot_dimension_numbers<[1], [0], [0], [1], [0, 0, 1, 1], [], []>} : vector<8x32xbf16>, vector<32x128xbf16>, vector<8x128xf32> -> vector<8x128xf32>
    %45 = vector.broadcast %22 : vector<1x128xf32> to vector<8x128xf32>
    %46 = arith.addf %45, %44 : vector<8x128xf32>
    %cst_18 = arith.constant dense<0.000000e+00> : vector<8x128xf32>
    %47 = tpu.matmul %24, %21, %cst_18 {dimension_numbers = #tpu.dot_dimension_numbers<[1], [0], [0], [1], [0, 0, 1, 1], [], []>} : vector<8x32xbf16>, vector<32x128xbf16>, vector<8x128xf32> -> vector<8x128xf32>
    %48 = arith.addf %46, %47 : vector<8x128xf32>
    %49 = arith.negf %48 : vector<8x128xf32>
    %50 = math.exp %49 : vector<8x128xf32>
    %cst_19 = arith.constant 1.000000e+00 : f32
    %51 = vector.broadcast %cst_19 : f32 to vector<8x128xf32>
    %52 = arith.addf %51, %50 : vector<8x128xf32>
    %53 = arith.divf %51, %52 : vector<8x128xf32>
    %54 = math.tanh %48 : vector<8x128xf32>
    %55 = vector.extract_strided_slice %53 {offsets = [0, 0], sizes = [8, 32], strides = [1, 1]} : vector<8x128xf32> to vector<8x32xf32>
    %56 = vector.extract_strided_slice %53 {offsets = [0, 32], sizes = [8, 32], strides = [1, 1]} : vector<8x128xf32> to vector<8x32xf32>
    %57 = vector.extract_strided_slice %53 {offsets = [0, 64], sizes = [8, 32], strides = [1, 1]} : vector<8x128xf32> to vector<8x32xf32>
    %58 = vector.extract_strided_slice %54 {offsets = [0, 96], sizes = [8, 32], strides = [1, 1]} : vector<8x128xf32> to vector<8x32xf32>
    %59 = arith.mulf %56, %23 : vector<8x32xf32>
    %60 = arith.mulf %55, %58 : vector<8x32xf32>
    %61 = arith.addf %59, %60 : vector<8x32xf32>
    %62 = math.tanh %61 : vector<8x32xf32>
    %63 = arith.mulf %57, %62 : vector<8x32xf32>
    %64 = arith.truncf %63 : vector<8x32xf32> to vector<8x32xbf16>
    %65 = vector.extract_strided_slice %7 {offsets = [8, 0], sizes = [8, 128], strides = [1, 1]} : vector<32x128xf32> to vector<8x128xf32>
    %cst_20 = arith.constant dense<0.000000e+00> : vector<8x128xf32>
    %66 = tpu.matmul %43, %17, %cst_20 {dimension_numbers = #tpu.dot_dimension_numbers<[1], [0], [0], [1], [0, 0, 1, 1], [], []>} : vector<8x32xbf16>, vector<32x128xbf16>, vector<8x128xf32> -> vector<8x128xf32>
    %67 = arith.addf %65, %66 : vector<8x128xf32>
    %68 = arith.negf %67 : vector<8x128xf32>
    %69 = math.exp %68 : vector<8x128xf32>
    %cst_21 = arith.constant 1.000000e+00 : f32
    %70 = vector.broadcast %cst_21 : f32 to vector<8x128xf32>
    %71 = arith.addf %70, %69 : vector<8x128xf32>
    %72 = arith.divf %70, %71 : vector<8x128xf32>
    %73 = math.tanh %67 : vector<8x128xf32>
    %74 = vector.extract_strided_slice %72 {offsets = [0, 0], sizes = [8, 32], strides = [1, 1]} : vector<8x128xf32> to vector<8x32xf32>
    %75 = vector.extract_strided_slice %72 {offsets = [0, 32], sizes = [8, 32], strides = [1, 1]} : vector<8x128xf32> to vector<8x32xf32>
    %76 = vector.extract_strided_slice %72 {offsets = [0, 64], sizes = [8, 32], strides = [1, 1]} : vector<8x128xf32> to vector<8x32xf32>
    %77 = vector.extract_strided_slice %73 {offsets = [0, 96], sizes = [8, 32], strides = [1, 1]} : vector<8x128xf32> to vector<8x32xf32>
    %78 = arith.mulf %75, %40 : vector<8x32xf32>
    %79 = arith.mulf %74, %77 : vector<8x32xf32>
    %80 = arith.addf %78, %79 : vector<8x32xf32>
    %81 = math.tanh %80 : vector<8x32xf32>
    %82 = arith.mulf %76, %81 : vector<8x32xf32>
    %83 = arith.truncf %82 : vector<8x32xf32> to vector<8x32xbf16>
    %cst_22 = arith.constant dense<0.000000e+00> : vector<8x128xf32>
    %84 = tpu.matmul %83, %19, %cst_22 {dimension_numbers = #tpu.dot_dimension_numbers<[1], [0], [0], [1], [0, 0, 1, 1], [], []>} : vector<8x32xbf16>, vector<32x128xbf16>, vector<8x128xf32> -> vector<8x128xf32>
    %85 = vector.broadcast %22 : vector<1x128xf32> to vector<8x128xf32>
    %86 = arith.addf %85, %84 : vector<8x128xf32>
    %cst_23 = arith.constant dense<0.000000e+00> : vector<8x128xf32>
    %87 = tpu.matmul %64, %21, %cst_23 {dimension_numbers = #tpu.dot_dimension_numbers<[1], [0], [0], [1], [0, 0, 1, 1], [], []>} : vector<8x32xbf16>, vector<32x128xbf16>, vector<8x128xf32> -> vector<8x128xf32>
    %88 = arith.addf %86, %87 : vector<8x128xf32>
    %89 = arith.negf %88 : vector<8x128xf32>
    %90 = math.exp %89 : vector<8x128xf32>
    %cst_24 = arith.constant 1.000000e+00 : f32
    %91 = vector.broadcast %cst_24 : f32 to vector<8x128xf32>
    %92 = arith.addf %91, %90 : vector<8x128xf32>
    %93 = arith.divf %91, %92 : vector<8x128xf32>
    %94 = math.tanh %88 : vector<8x128xf32>
    %95 = vector.extract_strided_slice %93 {offsets = [0, 0], sizes = [8, 32], strides = [1, 1]} : vector<8x128xf32> to vector<8x32xf32>
    %96 = vector.extract_strided_slice %93 {offsets = [0, 32], sizes = [8, 32], strides = [1, 1]} : vector<8x128xf32> to vector<8x32xf32>
    %97 = vector.extract_strided_slice %93 {offsets = [0, 64], sizes = [8, 32], strides = [1, 1]} : vector<8x128xf32> to vector<8x32xf32>
    %98 = vector.extract_strided_slice %94 {offsets = [0, 96], sizes = [8, 32], strides = [1, 1]} : vector<8x128xf32> to vector<8x32xf32>
    %99 = arith.mulf %96, %61 : vector<8x32xf32>
    %100 = arith.mulf %95, %98 : vector<8x32xf32>
    %101 = arith.addf %99, %100 : vector<8x32xf32>
    %102 = math.tanh %101 : vector<8x32xf32>
    %103 = arith.mulf %97, %102 : vector<8x32xf32>
    %104 = arith.truncf %103 : vector<8x32xf32> to vector<8x32xbf16>
    %105 = vector.extract_strided_slice %7 {offsets = [16, 0], sizes = [8, 128], strides = [1, 1]} : vector<32x128xf32> to vector<8x128xf32>
    %cst_25 = arith.constant dense<0.000000e+00> : vector<8x128xf32>
    %106 = tpu.matmul %83, %17, %cst_25 {dimension_numbers = #tpu.dot_dimension_numbers<[1], [0], [0], [1], [0, 0, 1, 1], [], []>} : vector<8x32xbf16>, vector<32x128xbf16>, vector<8x128xf32> -> vector<8x128xf32>
    %107 = arith.addf %105, %106 : vector<8x128xf32>
    %108 = arith.negf %107 : vector<8x128xf32>
    %109 = math.exp %108 : vector<8x128xf32>
    %cst_26 = arith.constant 1.000000e+00 : f32
    %110 = vector.broadcast %cst_26 : f32 to vector<8x128xf32>
    %111 = arith.addf %110, %109 : vector<8x128xf32>
    %112 = arith.divf %110, %111 : vector<8x128xf32>
    %113 = math.tanh %107 : vector<8x128xf32>
    %114 = vector.extract_strided_slice %112 {offsets = [0, 0], sizes = [8, 32], strides = [1, 1]} : vector<8x128xf32> to vector<8x32xf32>
    %115 = vector.extract_strided_slice %112 {offsets = [0, 32], sizes = [8, 32], strides = [1, 1]} : vector<8x128xf32> to vector<8x32xf32>
    %116 = vector.extract_strided_slice %112 {offsets = [0, 64], sizes = [8, 32], strides = [1, 1]} : vector<8x128xf32> to vector<8x32xf32>
    %117 = vector.extract_strided_slice %113 {offsets = [0, 96], sizes = [8, 32], strides = [1, 1]} : vector<8x128xf32> to vector<8x32xf32>
    %118 = arith.mulf %115, %80 : vector<8x32xf32>
    %119 = arith.mulf %114, %117 : vector<8x32xf32>
    %120 = arith.addf %118, %119 : vector<8x32xf32>
    %121 = math.tanh %120 : vector<8x32xf32>
    %122 = arith.mulf %116, %121 : vector<8x32xf32>
    %123 = arith.truncf %122 : vector<8x32xf32> to vector<8x32xbf16>
    %cst_27 = arith.constant dense<0.000000e+00> : vector<8x128xf32>
    %124 = tpu.matmul %123, %19, %cst_27 {dimension_numbers = #tpu.dot_dimension_numbers<[1], [0], [0], [1], [0, 0, 1, 1], [], []>} : vector<8x32xbf16>, vector<32x128xbf16>, vector<8x128xf32> -> vector<8x128xf32>
    %125 = vector.broadcast %22 : vector<1x128xf32> to vector<8x128xf32>
    %126 = arith.addf %125, %124 : vector<8x128xf32>
    %cst_28 = arith.constant dense<0.000000e+00> : vector<8x128xf32>
    %127 = tpu.matmul %104, %21, %cst_28 {dimension_numbers = #tpu.dot_dimension_numbers<[1], [0], [0], [1], [0, 0, 1, 1], [], []>} : vector<8x32xbf16>, vector<32x128xbf16>, vector<8x128xf32> -> vector<8x128xf32>
    %128 = arith.addf %126, %127 : vector<8x128xf32>
    %129 = arith.negf %128 : vector<8x128xf32>
    %130 = math.exp %129 : vector<8x128xf32>
    %cst_29 = arith.constant 1.000000e+00 : f32
    %131 = vector.broadcast %cst_29 : f32 to vector<8x128xf32>
    %132 = arith.addf %131, %130 : vector<8x128xf32>
    %133 = arith.divf %131, %132 : vector<8x128xf32>
    %134 = math.tanh %128 : vector<8x128xf32>
    %135 = vector.extract_strided_slice %133 {offsets = [0, 0], sizes = [8, 32], strides = [1, 1]} : vector<8x128xf32> to vector<8x32xf32>
    %136 = vector.extract_strided_slice %133 {offsets = [0, 32], sizes = [8, 32], strides = [1, 1]} : vector<8x128xf32> to vector<8x32xf32>
    %137 = vector.extract_strided_slice %133 {offsets = [0, 64], sizes = [8, 32], strides = [1, 1]} : vector<8x128xf32> to vector<8x32xf32>
    %138 = vector.extract_strided_slice %134 {offsets = [0, 96], sizes = [8, 32], strides = [1, 1]} : vector<8x128xf32> to vector<8x32xf32>
    %139 = arith.mulf %136, %101 : vector<8x32xf32>
    %140 = arith.mulf %135, %138 : vector<8x32xf32>
    %141 = arith.addf %139, %140 : vector<8x32xf32>
    %142 = math.tanh %141 : vector<8x32xf32>
    %143 = arith.mulf %137, %142 : vector<8x32xf32>
    %144 = arith.truncf %143 : vector<8x32xf32> to vector<8x32xbf16>
    %145 = vector.extract_strided_slice %7 {offsets = [24, 0], sizes = [8, 128], strides = [1, 1]} : vector<32x128xf32> to vector<8x128xf32>
    %cst_30 = arith.constant dense<0.000000e+00> : vector<8x128xf32>
    %146 = tpu.matmul %123, %17, %cst_30 {dimension_numbers = #tpu.dot_dimension_numbers<[1], [0], [0], [1], [0, 0, 1, 1], [], []>} : vector<8x32xbf16>, vector<32x128xbf16>, vector<8x128xf32> -> vector<8x128xf32>
    %147 = arith.addf %145, %146 : vector<8x128xf32>
    %148 = arith.negf %147 : vector<8x128xf32>
    %149 = math.exp %148 : vector<8x128xf32>
    %cst_31 = arith.constant 1.000000e+00 : f32
    %150 = vector.broadcast %cst_31 : f32 to vector<8x128xf32>
    %151 = arith.addf %150, %149 : vector<8x128xf32>
    %152 = arith.divf %150, %151 : vector<8x128xf32>
    %153 = math.tanh %147 : vector<8x128xf32>
    %154 = vector.extract_strided_slice %152 {offsets = [0, 0], sizes = [8, 32], strides = [1, 1]} : vector<8x128xf32> to vector<8x32xf32>
    %155 = vector.extract_strided_slice %152 {offsets = [0, 32], sizes = [8, 32], strides = [1, 1]} : vector<8x128xf32> to vector<8x32xf32>
    %156 = vector.extract_strided_slice %152 {offsets = [0, 64], sizes = [8, 32], strides = [1, 1]} : vector<8x128xf32> to vector<8x32xf32>
    %157 = vector.extract_strided_slice %153 {offsets = [0, 96], sizes = [8, 32], strides = [1, 1]} : vector<8x128xf32> to vector<8x32xf32>
    %158 = arith.mulf %155, %120 : vector<8x32xf32>
    %159 = arith.mulf %154, %157 : vector<8x32xf32>
    %160 = arith.addf %158, %159 : vector<8x32xf32>
    %161 = math.tanh %160 : vector<8x32xf32>
    %162 = arith.mulf %156, %161 : vector<8x32xf32>
    %163 = arith.truncf %162 : vector<8x32xf32> to vector<8x32xbf16>
    %cst_32 = arith.constant dense<0.000000e+00> : vector<8x128xf32>
    %164 = tpu.matmul %163, %19, %cst_32 {dimension_numbers = #tpu.dot_dimension_numbers<[1], [0], [0], [1], [0, 0, 1, 1], [], []>} : vector<8x32xbf16>, vector<32x128xbf16>, vector<8x128xf32> -> vector<8x128xf32>
    %165 = vector.broadcast %22 : vector<1x128xf32> to vector<8x128xf32>
    %166 = arith.addf %165, %164 : vector<8x128xf32>
    %cst_33 = arith.constant dense<0.000000e+00> : vector<8x128xf32>
    %167 = tpu.matmul %144, %21, %cst_33 {dimension_numbers = #tpu.dot_dimension_numbers<[1], [0], [0], [1], [0, 0, 1, 1], [], []>} : vector<8x32xbf16>, vector<32x128xbf16>, vector<8x128xf32> -> vector<8x128xf32>
    %168 = arith.addf %166, %167 : vector<8x128xf32>
    %169 = arith.negf %168 : vector<8x128xf32>
    %170 = math.exp %169 : vector<8x128xf32>
    %cst_34 = arith.constant 1.000000e+00 : f32
    %171 = vector.broadcast %cst_34 : f32 to vector<8x128xf32>
    %172 = arith.addf %171, %170 : vector<8x128xf32>
    %173 = arith.divf %171, %172 : vector<8x128xf32>
    %174 = math.tanh %168 : vector<8x128xf32>
    %175 = vector.extract_strided_slice %173 {offsets = [0, 0], sizes = [8, 32], strides = [1, 1]} : vector<8x128xf32> to vector<8x32xf32>
    %176 = vector.extract_strided_slice %173 {offsets = [0, 32], sizes = [8, 32], strides = [1, 1]} : vector<8x128xf32> to vector<8x32xf32>
    %177 = vector.extract_strided_slice %173 {offsets = [0, 64], sizes = [8, 32], strides = [1, 1]} : vector<8x128xf32> to vector<8x32xf32>
    %178 = vector.extract_strided_slice %174 {offsets = [0, 96], sizes = [8, 32], strides = [1, 1]} : vector<8x128xf32> to vector<8x32xf32>
    %179 = arith.mulf %176, %141 : vector<8x32xf32>
    %180 = arith.mulf %175, %178 : vector<8x32xf32>
    %181 = arith.addf %179, %180 : vector<8x32xf32>
    %182 = math.tanh %181 : vector<8x32xf32>
    %183 = arith.mulf %177, %182 : vector<8x32xf32>
    %184 = arith.truncf %183 : vector<8x32xf32> to vector<8x32xbf16>
    %cst_35 = arith.constant dense<0.000000e+00> : vector<8x128xf32>
    %185 = tpu.matmul %163, %17, %cst_35 {dimension_numbers = #tpu.dot_dimension_numbers<[1], [0], [0], [1], [0, 0, 1, 1], [], []>} : vector<8x32xbf16>, vector<32x128xbf16>, vector<8x128xf32> -> vector<8x128xf32>
    %186 = arith.addf %15, %185 : vector<8x128xf32>
    %187 = arith.negf %186 : vector<8x128xf32>
    %188 = math.exp %187 : vector<8x128xf32>
    %cst_36 = arith.constant 1.000000e+00 : f32
    %189 = vector.broadcast %cst_36 : f32 to vector<8x128xf32>
    %190 = arith.addf %189, %188 : vector<8x128xf32>
    %191 = arith.divf %189, %190 : vector<8x128xf32>
    %192 = math.tanh %186 : vector<8x128xf32>
    %193 = vector.extract_strided_slice %191 {offsets = [0, 0], sizes = [8, 32], strides = [1, 1]} : vector<8x128xf32> to vector<8x32xf32>
    %194 = vector.extract_strided_slice %191 {offsets = [0, 32], sizes = [8, 32], strides = [1, 1]} : vector<8x128xf32> to vector<8x32xf32>
    %195 = vector.extract_strided_slice %191 {offsets = [0, 64], sizes = [8, 32], strides = [1, 1]} : vector<8x128xf32> to vector<8x32xf32>
    %196 = vector.extract_strided_slice %192 {offsets = [0, 96], sizes = [8, 32], strides = [1, 1]} : vector<8x128xf32> to vector<8x32xf32>
    %197 = arith.mulf %194, %160 : vector<8x32xf32>
    %198 = arith.mulf %193, %196 : vector<8x32xf32>
    %199 = arith.addf %197, %198 : vector<8x32xf32>
    %200 = math.tanh %199 : vector<8x32xf32>
    %201 = arith.mulf %195, %200 : vector<8x32xf32>
    %202 = arith.truncf %201 : vector<8x32xf32> to vector<8x32xbf16>
    %cst_37 = arith.constant dense<0.000000e+00> : vector<8x128xf32>
    %203 = tpu.matmul %202, %19, %cst_37 {dimension_numbers = #tpu.dot_dimension_numbers<[1], [0], [0], [1], [0, 0, 1, 1], [], []>} : vector<8x32xbf16>, vector<32x128xbf16>, vector<8x128xf32> -> vector<8x128xf32>
    %204 = vector.broadcast %22 : vector<1x128xf32> to vector<8x128xf32>
    %205 = arith.addf %204, %203 : vector<8x128xf32>
    %cst_38 = arith.constant dense<0.000000e+00> : vector<8x128xf32>
    %206 = tpu.matmul %184, %21, %cst_38 {dimension_numbers = #tpu.dot_dimension_numbers<[1], [0], [0], [1], [0, 0, 1, 1], [], []>} : vector<8x32xbf16>, vector<32x128xbf16>, vector<8x128xf32> -> vector<8x128xf32>
    %207 = arith.addf %205, %206 : vector<8x128xf32>
    %208 = arith.negf %207 : vector<8x128xf32>
    %209 = math.exp %208 : vector<8x128xf32>
    %cst_39 = arith.constant 1.000000e+00 : f32
    %210 = vector.broadcast %cst_39 : f32 to vector<8x128xf32>
    %211 = arith.addf %210, %209 : vector<8x128xf32>
    %212 = arith.divf %210, %211 : vector<8x128xf32>
    %213 = math.tanh %207 : vector<8x128xf32>
    %214 = vector.extract_strided_slice %212 {offsets = [0, 0], sizes = [8, 32], strides = [1, 1]} : vector<8x128xf32> to vector<8x32xf32>
    %215 = vector.extract_strided_slice %212 {offsets = [0, 32], sizes = [8, 32], strides = [1, 1]} : vector<8x128xf32> to vector<8x32xf32>
    %216 = vector.extract_strided_slice %212 {offsets = [0, 64], sizes = [8, 32], strides = [1, 1]} : vector<8x128xf32> to vector<8x32xf32>
    %217 = vector.extract_strided_slice %213 {offsets = [0, 96], sizes = [8, 32], strides = [1, 1]} : vector<8x128xf32> to vector<8x32xf32>
    %218 = arith.mulf %215, %181 : vector<8x32xf32>
    %219 = arith.mulf %214, %217 : vector<8x32xf32>
    %220 = arith.addf %218, %219 : vector<8x32xf32>
    %221 = math.tanh %220 : vector<8x32xf32>
    %222 = arith.mulf %216, %221 : vector<8x32xf32>
    %c904 = arith.constant 904 : index
    %c0_40 = arith.constant 0 : index
    %223 = vector.load %arg2[%c904, %c0_40] : memref<968x128xf32, #tpu.memory_space<vmem>>, vector<32x16xf32>
    %c899 = arith.constant 899 : index
    %c0_41 = arith.constant 0 : index
    %224 = vector.load %arg2[%c899, %c0_41] : memref<968x128xf32, #tpu.memory_space<vmem>>, vector<1x16xf32>
    %c936 = arith.constant 936 : index
    %c0_42 = arith.constant 0 : index
    %225 = vector.load %arg2[%c936, %c0_42] : memref<968x128xf32, #tpu.memory_space<vmem>>, vector<16x8xf32>
    %c900 = arith.constant 900 : index
    %c0_43 = arith.constant 0 : index
    %226 = vector.load %arg2[%c900, %c0_43] : memref<968x128xf32, #tpu.memory_space<vmem>>, vector<1x8xf32>
    %c952 = arith.constant 952 : index
    %c0_44 = arith.constant 0 : index
    %227 = vector.load %arg2[%c952, %c0_44] : memref<968x128xf32, #tpu.memory_space<vmem>>, vector<8x4xf32>
    %c901 = arith.constant 901 : index
    %c0_45 = arith.constant 0 : index
    %228 = vector.load %arg2[%c901, %c0_45] : memref<968x128xf32, #tpu.memory_space<vmem>>, vector<1x4xf32>
    %c960 = arith.constant 960 : index
    %c0_46 = arith.constant 0 : index
    %229 = vector.load %arg2[%c960, %c0_46] : memref<968x128xf32, #tpu.memory_space<vmem>>, vector<4x4xf32>
    %c902 = arith.constant 902 : index
    %c0_47 = arith.constant 0 : index
    %230 = vector.load %arg2[%c902, %c0_47] : memref<968x128xf32, #tpu.memory_space<vmem>>, vector<1x4xf32>
    %cst_48 = arith.constant dense<0.000000e+00> : vector<8x16xf32>
    %231 = tpu.matmul %222, %223, %cst_48 {dimension_numbers = #tpu.dot_dimension_numbers<[1], [0], [0], [1], [0, 0, 1, 1], [], []>} : vector<8x32xf32>, vector<32x16xf32>, vector<8x16xf32> -> vector<8x16xf32>
    %232 = vector.broadcast %224 : vector<1x16xf32> to vector<8x16xf32>
    %233 = arith.addf %231, %232 : vector<8x16xf32>
    %cst_49 = arith.constant 0.000000e+00 : f32
    %234 = vector.broadcast %cst_49 : f32 to vector<8x16xf32>
    %235 = arith.cmpf ogt, %233, %234 : vector<8x16xf32>
    %cst_50 = arith.constant 0.00999999977 : f32
    %236 = vector.broadcast %cst_50 : f32 to vector<8x16xf32>
    %237 = arith.mulf %236, %233 : vector<8x16xf32>
    %238 = arith.select %235, %233, %237 : vector<8x16xi1>, vector<8x16xf32>
    %cst_51 = arith.constant dense<0.000000e+00> : vector<8x8xf32>
    %239 = tpu.matmul %238, %225, %cst_51 {dimension_numbers = #tpu.dot_dimension_numbers<[1], [0], [0], [1], [0, 0, 1, 1], [], []>} : vector<8x16xf32>, vector<16x8xf32>, vector<8x8xf32> -> vector<8x8xf32>
    %240 = vector.broadcast %226 : vector<1x8xf32> to vector<8x8xf32>
    %241 = arith.addf %239, %240 : vector<8x8xf32>
    %cst_52 = arith.constant 0.000000e+00 : f32
    %242 = vector.broadcast %cst_52 : f32 to vector<8x8xf32>
    %243 = arith.cmpf ogt, %241, %242 : vector<8x8xf32>
    %cst_53 = arith.constant 0.00999999977 : f32
    %244 = vector.broadcast %cst_53 : f32 to vector<8x8xf32>
    %245 = arith.mulf %244, %241 : vector<8x8xf32>
    %246 = arith.select %243, %241, %245 : vector<8x8xi1>, vector<8x8xf32>
    %cst_54 = arith.constant dense<0.000000e+00> : vector<8x4xf32>
    %247 = tpu.matmul %246, %227, %cst_54 {dimension_numbers = #tpu.dot_dimension_numbers<[1], [0], [0], [1], [0, 0, 1, 1], [], []>} : vector<8x8xf32>, vector<8x4xf32>, vector<8x4xf32> -> vector<8x4xf32>
    %248 = vector.broadcast %228 : vector<1x4xf32> to vector<8x4xf32>
    %249 = arith.addf %247, %248 : vector<8x4xf32>
    %cst_55 = arith.constant 0.000000e+00 : f32
    %250 = vector.broadcast %cst_55 : f32 to vector<8x4xf32>
    %251 = arith.cmpf ogt, %249, %250 : vector<8x4xf32>
    %cst_56 = arith.constant 0.00999999977 : f32
    %252 = vector.broadcast %cst_56 : f32 to vector<8x4xf32>
    %253 = arith.mulf %252, %249 : vector<8x4xf32>
    %254 = arith.select %251, %249, %253 : vector<8x4xi1>, vector<8x4xf32>
    %cst_57 = arith.constant dense<0.000000e+00> : vector<8x4xf32>
    %255 = tpu.matmul %254, %229, %cst_57 {dimension_numbers = #tpu.dot_dimension_numbers<[1], [0], [0], [1], [0, 0, 1, 1], [], []>} : vector<8x4xf32>, vector<4x4xf32>, vector<8x4xf32> -> vector<8x4xf32>
    %256 = vector.broadcast %230 : vector<1x4xf32> to vector<8x4xf32>
    %257 = arith.addf %255, %256 : vector<8x4xf32>
    %c0_58 = arith.constant 0 : index
    %c0_59 = arith.constant 0 : index
    %258 = vector.load %arg3[%c0_58, %c0_59] : memref<8x4xf32, #tpu.memory_space<vmem>>, vector<8x4xf32>
    tpu.vector_store %arg3[%c0_58, %c0_59], %257 {strides = array<i32>} : memref<8x4xf32, #tpu.memory_space<vmem>>, vector<8x4xf32>,
    return
  }
}

</mosaic_0001>

<bundles_post_ra>
// kernel: _lambda_.1
= control target key start
LH: loop header
LB: loop body
LE: loop exit
PB: predicated region body
PF: predicated region fallthrough
CT: control target
= control target key end

     0   :  { %vm218_vm0 = vcmask 1043456   ;;  %vm431_vm1 = vcmask 1040384   ;;  %vm211_vm2 = vcmask 195584   ;;  %vm432_vm3 = vcmask 1041408   ;;  %s2244_s16 = smov 64   ;;  %s2959_s2 = inlined_call_operand.vmem [shape: f32[968,128], index: 2, kind: input, shape index: {}]   ;;  %s2960_s0 = inlined_call_operand.vmem [shape: f32[32,792], index: 0, kind: input, shape index: {}]   ;;  %s2961_s1 = inlined_call_operand.vmem [shape: f32[8,3], index: 1, kind: input, shape index: {}]   ;;  %s2962_s3 = inlined_call_operand.vmem [shape: f32[8,4], index: 3, kind: output, shape index: {}]  }
   0x1   :  { %v31_v0 = vld [vmem:[%s2959_s2 + $0x80] sm:$0xff]  ;;  %v32_v1 = vld [vmem:[%s2959_s2 + $0x88] sm:$0xff]  ;;  %v33_v11 = vld [vmem:[%s2959_s2 + $0x90] sm:$0xff]  ;;  %vm2241_vm4 = vmmov 0   ;;  %vm427_vm5 = vcmask 23552   ;;  %vm497_vm6 = vcmask 261120  }
   0x2   :  { %v15_v2 = vld [vmem:[%s2959_s2] sm:$0xff]  ;;  %v122_v3 = vpack.c.bf16 %v32_v1, %v31_v0  ;;  %v16_v4 = vld [vmem:[%s2959_s2 + $0x8] sm:$0xff]  ;;  %v34_v13 = vld [vmem:[%s2959_s2 + $0x98] sm:$0xff]  ;;  %vm1521_vm8 = vcmask 130048   ;;  %vm1602_vm10 = vcmask 64512   ;;  %vm1683_vm12 = vcmask 31744  }
   0x3   :  { %v63_v5 = vld [vmem:[%s2959_s2 + $0x180] sm:$0xff]  ;;  %v64_v6 = vld [vmem:[%s2959_s2 + $0x188] sm:$0xff]  ;;  %v114_v7 = vpack.c.bf16 %v16_v4, %v15_v2  ;;  %v17_v14 = vld [vmem:[%s2959_s2 + $0x10] sm:$0xff]  ;;  %v123_v16 = vpack.c.bf16 %v34_v13, %v33_v11 }
   0x4   :  { %v138_v8 = vpack.c.bf16 %v64_v6, %v63_v5  ;;  %v47_v9 = vld [vmem:[%s2959_s2 + $0x100] sm:$0xff]  ;;  %v48_v10 = vld [vmem:[%s2959_s2 + $0x108] sm:$0xff]  ;;  %1803 = vmatprep.subr.bf16.mxu0 %v122_v3  ;;  %v18_v15 = vld [vmem:[%s2959_s2 + $0x18] sm:$0xff] }
   0x5   :  { %v130_v12 = vpack.c.bf16 %v48_v10, %v47_v9  ;;  %1804 = vmatpush3.bf16.msra.mxu0 %v114_v7  ;;  %v115_v17 = vpack.c.bf16 %v18_v15, %v17_v14  ;;  %v65_v18 = vld [vmem:[%s2959_s2 + $0x190] sm:$0xff]  ;;  %v66_v19 = vld [vmem:[%s2959_s2 + $0x198] sm:$0xff]  ;;  %v35_v23 = vld [vmem:[%s2959_s2 + $0xa0] sm:$0xff] }
   0x6   :  { %1831 = vmatprep.subr.bf16.mxu1 %v138_v8  ;;  %v49_v20 = vld [vmem:[%s2959_s2 + $0x110] sm:$0xff]  ;;  %v139_v21 = vpack.c.bf16 %v66_v19, %v65_v18  ;;  %v50_v22 = vld [vmem:[%s2959_s2 + $0x118] sm:$0xff]  ;;  %v36_v24 = vld [vmem:[%s2959_s2 + $0xa8] sm:$0xff]  ;;  %1805 = vmatprep.subr.bf16.mxu0 %v123_v16 }
   0x7   :  { %1832 = vmatpush3.bf16.msra.mxu1 %v130_v12  ;;  %v131_v25 = vpack.c.bf16 %v50_v22, %v49_v20  ;;  %v124_v26 = vpack.c.bf16 %v36_v24, %v35_v23  ;;  %v19_v27 = vld [vmem:[%s2959_s2 + $0x20] sm:$0xff]  ;;  %v20_v28 = vld [vmem:[%s2959_s2 + $0x28] sm:$0xff]  ;;  %v37_v35 = vld [vmem:[%s2959_s2 + $0xb0] sm:$0xff] }
   0x8   :  { %v67_v29 = vld [vmem:[%s2959_s2 + $0x1a0] sm:$0xff]  ;;  %1833 = vmatprep.subr.bf16.mxu1 %v139_v21  ;;  %v68_v30 = vld [vmem:[%s2959_s2 + $0x1a8] sm:$0xff]  ;;  %v116_v33 = vpack.c.bf16 %v20_v28, %v19_v27  ;;  %v38_v36 = vld [vmem:[%s2959_s2 + $0xb8] sm:$0xff] }
   0x9   :  { %v51_v31 = vld [vmem:[%s2959_s2 + $0x120] sm:$0xff]  ;;  %v52_v32 = vld [vmem:[%s2959_s2 + $0x128] sm:$0xff]  ;;  %1806 = vmatpush3.bf16.msra.mxu0 %v115_v17  ;;  %v140_v34 = vpack.c.bf16 %v68_v30, %v67_v29  ;;  %v21_v37 = vld [vmem:[%s2959_s2 + $0x30] sm:$0xff]  ;;  %v125_v39 = vpack.c.bf16 %v38_v36, %v37_v35 }
   0xa   :  { %1807 = vmatprep.subr.bf16.mxu0 %v124_v26  ;;  %v132_v38 = vpack.c.bf16 %v52_v32, %v51_v31  ;;  %v22_v40 = vld [vmem:[%s2959_s2 + $0x38] sm:$0xff]  ;;  %v69_v41 = vld [vmem:[%s2959_s2 + $0x1b0] sm:$0xff]  ;;  %v39_v46 = vld [vmem:[%s2959_s2 + $0xc0] sm:$0xff] }
   0xb   :  { %1834 = vmatpush3.bf16.msra.mxu1 %v131_v25  ;;  %v70_v42 = vld [vmem:[%s2959_s2 + $0x1b8] sm:$0xff]  ;;  %v53_v44 = vld [vmem:[%s2959_s2 + $0x130] sm:$0xff]  ;;  %v40_v47 = vld [vmem:[%s2959_s2 + $0xc8] sm:$0xff]  ;;  %v117_v48 = vpack.c.bf16 %v22_v40, %v21_v37 }
   0xc   :  { %1835 = vmatprep.subr.bf16.mxu1 %v140_v34  ;;  %v141_v43 = vpack.c.bf16 %v70_v42, %v69_v41  ;;  %v54_v45 = vld [vmem:[%s2959_s2 + $0x138] sm:$0xff]  ;;  %v71_v49 = vld [vmem:[%s2959_s2 + $0x1c0] sm:$0xff]  ;;  %v72_v50 = vld [vmem:[%s2959_s2 + $0x1c8] sm:$0xff]  ;;  %v126_v52 = vpack.c.bf16 %v40_v47, %v39_v46 }
   0xd   :  { %1808 = vmatpush3.bf16.msra.mxu0 %v116_v33  ;;  %v133_v51 = vpack.c.bf16 %v54_v45, %v53_v44  ;;  %v23_v53 = vld [vmem:[%s2959_s2 + $0x40] sm:$0xff]  ;;  %v24_v54 = vld [vmem:[%s2959_s2 + $0x48] sm:$0xff]  ;;  %v142_v56 = vpack.c.bf16 %v72_v50, %v71_v49  ;;  %v41_v58 = vld [vmem:[%s2959_s2 + $0xd0] sm:$0xff] }
   0xe   :  { %1809 = vmatprep.subr.bf16.mxu0 %v125_v39  ;;  %v55_v55 = vld [vmem:[%s2959_s2 + $0x140] sm:$0xff]  ;;  %v56_v57 = vld [vmem:[%s2959_s2 + $0x148] sm:$0xff]  ;;  %v42_v59 = vld [vmem:[%s2959_s2 + $0xd8] sm:$0xff]  ;;  %v118_v62 = vpack.c.bf16 %v24_v54, %v23_v53 }
   0xf   :  { %1836 = vmatpush3.bf16.msra.mxu1 %v132_v38  ;;  %v73_v60 = vld [vmem:[%s2959_s2 + $0x1d0] sm:$0xff]  ;;  %v74_v61 = vld [vmem:[%s2959_s2 + $0x1d8] sm:$0xff]  ;;  %v134_v63 = vpack.c.bf16 %v56_v57, %v55_v55  ;;  %v127_v0 = vpack.c.bf16 %v42_v59, %v41_v58  ;;  %v43_v6 = vld [vmem:[%s2959_s2 + $0xe0] sm:$0xff] }
  0x10   :  { %1837 = vmatprep.subr.bf16.mxu1 %v141_v43  ;;  %v25_v1 = vld [vmem:[%s2959_s2 + $0x50] sm:$0xff]  ;;  %v26_v2 = vld [vmem:[%s2959_s2 + $0x58] sm:$0xff]  ;;  %v143_v4 = vpack.c.bf16 %v74_v61, %v73_v60  ;;  %v44_v7 = vld [vmem:[%s2959_s2 + $0xe8] sm:$0xff] }
  0x11   :  { %1810 = vmatpush3.bf16.msra.mxu0 %v117_v48  ;;  %v57_v3 = vld [vmem:[%s2959_s2 + $0x150] sm:$0xff]  ;;  %v58_v5 = vld [vmem:[%s2959_s2 + $0x158] sm:$0xff]  ;;  %v75_v8 = vld [vmem:[%s2959_s2 + $0x1e0] sm:$0xff]  ;;  %v119_v10 = vpack.c.bf16 %v26_v2, %v25_v1  ;;  %v128_v15 = vpack.c.bf16 %v44_v7, %v43_v6 }
  0x12   :  { %1811 = vmatprep.subr.bf16.mxu0 %v126_v52  ;;  %v76_v9 = vld [vmem:[%s2959_s2 + $0x1e8] sm:$0xff]  ;;  %v27_v11 = vld [vmem:[%s2959_s2 + $0x60] sm:$0xff]  ;;  %v135_v14 = vpack.c.bf16 %v58_v5, %v57_v3  ;;  %v45_v20 = vld [vmem:[%s2959_s2 + $0xf0] sm:$0xff] }
  0x13   :  { %1838 = vmatpush3.bf16.msra.mxu1 %v133_v51  ;;  %v28_v12 = vld [vmem:[%s2959_s2 + $0x68] sm:$0xff]  ;;  %v59_v16 = vld [vmem:[%s2959_s2 + $0x160] sm:$0xff]  ;;  %v144_v19 = vpack.c.bf16 %v76_v9, %v75_v8  ;;  %v46_v21 = vld [vmem:[%s2959_s2 + $0xf8] sm:$0xff] }
  0x14   :  { %1839 = vmatprep.subr.bf16.mxu1 %v142_v56  ;;  %v165_v13 = vld [vmem:[%s2960_s0 + $0x8] sm:$0xff]  ;;  %v172_v18 = vld [vmem:[%s2960_s0 + $0x40] sm:$0xff]  ;;  %v77_v22 = vld [vmem:[%s2959_s2 + $0x1f0] sm:$0xff]  ;;  %v120_v27 = vpack.c.bf16 %v28_v12, %v27_v11  ;;  %v129_v30 = vpack.c.bf16 %v46_v21, %v45_v20 }
  0x15   :  { %1812 = vmatpush3.bf16.msra.mxu0 %v118_v62  ;;  %v60_v17 = vld [vmem:[%s2959_s2 + $0x168] sm:$0xff]  ;;  %v193_v23 = vpack.c.bf16 %v172_v18, %v165_v13  ;;  %v78_v24 = vld [vmem:[%s2959_s2 + $0x1f8] sm:$0xff]  ;;  %v174_v26 = vld [vmem:[%s2960_s0 + $0x50] sm:$0xff] }
  0x16   :  { %1813 = vmatprep.subr.bf16.mxu0 %v127_v0  ;;  %v167_v25 = vld [vmem:[%s2960_s0 + $0x18] sm:$0xff]  ;;  %v136_v29 = vpack.c.bf16 %v60_v17, %v59_v16  ;;  %v29_v31 = vld [vmem:[%s2959_s2 + $0x70] sm:$0xff]  ;;  %v145_v34 = vpack.c.bf16 %v78_v24, %v77_v22  ;;  %v95_v36 = vld [vmem:[%s2959_s2 + $0x280] sm:$0xff] }
  0x17   :  { %1840 = vmatpush3.bf16.msra.mxu1 %v134_v63  ;;  %254 = vmatprep.mubr.bf16.mxu0 %v193_v23  ;;  %v195_v28 = vpack.c.bf16 %v174_v26, %v167_v25  ;;  %v30_v32 = vld [vmem:[%s2959_s2 + $0x78] sm:$0xff]  ;;  %v61_v33 = vld [vmem:[%s2959_s2 + $0x170] sm:$0xff]  ;;  %v96_v37 = vld [vmem:[%s2959_s2 + $0x288] sm:$0xff] }
  0x18   :  { %1841 = vmatprep.subr.bf16.mxu1 %v143_v4  ;;  %v62_v35 = vld [vmem:[%s2959_s2 + $0x178] sm:$0xff]  ;;  %v111_v38 = vld [vmem:[%s2959_s2 + $0x300] sm:$0xff]  ;;  %v112_v39 = vld [vmem:[%s2959_s2 + $0x308] sm:$0xff]  ;;  %v121_v40 = vpack.c.bf16 %v30_v32, %v29_v31  ;;  %v154_v45 = vpack.c.bf16 %v96_v37, %v95_v36  ;;  %v2240_v31 = vmov 65535  }
  0x19   :  { %1814 = vmatpush3.bf16.msra.mxu0 %v119_v10  ;;  %303 = vmatprep.mubr.bf16.mxu1 %v195_v28  ;;  %v164_v41 = vld [vmem:[%s2960_s0] sm:$0xff]  ;;  %v171_v42 = vld [vmem:[%s2960_s0 + $0x38] sm:$0xff]  ;;  %v137_v44 = vpack.c.bf16 %v62_v35, %v61_v33  ;;  %v80_v46 = vld [vmem:[%s2959_s2 + $0x208] sm:$0xff]  ;;  %v162_v51 = vpack.c.bf16 %v112_v39, %v111_v38  ;;  %v2239_v28 = vmov 0.0   ;;  %v433_v32 = vsel %vm431_vm1, 4294967295, %v2240_v31 }
  0x1a   :  { %1815 = vmatprep.subr.bf16.mxu0 %v128_v15  ;;  %v79_v43 = vld [vmem:[%s2959_s2 + $0x200] sm:$0xff]  ;;  %v166_v47 = vld [vmem:[%s2960_s0 + $0x10] sm:$0xff]  ;;  %v173_v48 = vld [vmem:[%s2960_s0 + $0x48] sm:$0xff]  ;;  %v192_v53 = vpack.c.bf16 %v171_v42, %v164_v41  ;;  %v434_v42 = vsel %vm432_vm3, %v433_v32, 0 }
  0x1b   :  { %1842 = vmatpush3.bf16.msra.mxu1 %v135_v14  ;;  %v97_v49 = vld [vmem:[%s2959_s2 + $0x290] sm:$0xff]  ;;  %v98_v50 = vld [vmem:[%s2959_s2 + $0x298] sm:$0xff]  ;;  %v181_v55 = vld [vmem:[%s2960_s0 + $0x88] sm:$0xff]  ;;  %v146_v57 = vpack.c.bf16 %v80_v46, %v79_v43  ;;  %v194_v58 = vpack.c.bf16 %v173_v48, %v166_v47 }
  0x1c   :  { %1843 = vmatprep.subr.bf16.mxu1 %v144_v19  ;;  %v179_v52 = vld [vmem:[%s2960_s0 + $0x78] sm:$0xff]  ;;  %v186_v54 = vld [vmem:[%s2960_s0 + $0xb0] sm:$0xff]  ;;  %v188_v56 = vld [vmem:[%s2960_s0 + $0xc0] sm:$0xff]  ;;  %v155_v60 = vpack.c.bf16 %v98_v50, %v97_v49 }
  0x1d   :  { %1816 = vmatpush3.bf16.msra.mxu0 %v120_v27  ;;  %v113_v59 = vld [vmem:[%s2959_s2 + $0x310] sm:$0xff]  ;;  %v82_v62 = vld [vmem:[%s2959_s2 + $0x218] sm:$0xff]  ;;  %v99_v63 = vld [vmem:[%s2959_s2 + $0x2a0] sm:$0xff]  ;;  %v200_v1 = vpack.c.bf16 %v186_v54, %v179_v52  ;;  %v202_v2 = vpack.c.bf16 %v188_v56, %v181_v55 }
  0x1e   :  { %1817 = vmatprep.subr.bf16.mxu0 %v129_v30  ;;  %v81_v61 = vld [vmem:[%s2959_s2 + $0x210] sm:$0xff]  ;;  %v100_v0 = vld [vmem:[%s2959_s2 + $0x2a8] sm:$0xff]  ;;  %v163_v3 = vpack.c.bf16 %v113_v59, %v113_v59  ;;  %v83_v4 = vld [vmem:[%s2959_s2 + $0x220] sm:$0xff] }
  0x1f   :  { %1844 = vmatpush3.bf16.msra.mxu1 %v136_v29  ;;  %v147_v5 = vpack.c.bf16 %v82_v62, %v81_v61  ;;  %v84_v6 = vld [vmem:[%s2959_s2 + $0x228] sm:$0xff]  ;;  %v178_v7 = vld [vmem:[%s2960_s0 + $0x70] sm:$0xff]  ;;  %v156_v9 = vpack.c.bf16 %v100_v0, %v99_v63  ;;  %v180_v10 = vld [vmem:[%s2960_s0 + $0x80] sm:$0xff] }
  0x20   :  { %1845 = vmatprep.subr.bf16.mxu1 %v145_v34  ;;  %v185_v8 = vld [vmem:[%s2960_s0 + $0xa8] sm:$0xff]  ;;  %v187_v11 = vld [vmem:[%s2960_s0 + $0xb8] sm:$0xff]  ;;  %v101_v12 = vld [vmem:[%s2959_s2 + $0x2b0] sm:$0xff]  ;;  %v220_v14 = vsel %vm218_vm0, %v163_v3, 0  ;;  %v148_v18 = vpack.c.bf16 %v84_v6, %v83_v4 }
  0x21   :  { %1818 = vmatpush3.bf16.msra.mxu0 %v121_v40  ;;  %v102_v13 = vld [vmem:[%s2959_s2 + $0x2b8] sm:$0xff]  ;;  %v170_v15 = vld [vmem:[%s2960_s0 + $0x30] sm:$0xff]  ;;  %v177_v16 = vld [vmem:[%s2960_s0 + $0x68] sm:$0xff]  ;;  %v199_v17 = vpack.c.bf16 %v185_v8, %v178_v7  ;;  %v201_v19 = vpack.c.bf16 %v187_v11, %v180_v10 }
  0x22   :  { %1859 = vmatprep.subr.bf16.mxu0 %v154_v45  ;;  %v85_v20 = vld [vmem:[%s2959_s2 + $0x230] sm:$0xff]  ;;  %v157_v21 = vpack.c.bf16 %v102_v13, %v101_v12  ;;  %v86_v22 = vld [vmem:[%s2959_s2 + $0x238] sm:$0xff]  ;;  %v198_v23 = vpack.c.bf16 %v177_v16, %v170_v15  ;;  %v169_v24 = vld [vmem:[%s2960_s0 + $0x28] sm:$0xff]  ;;  %v2242_v12 = vmov 0  }
  0x23   :  { %1846 = vmatpush3.bf16.msra.mxu1 %v137_v44  ;;  %v176_v25 = vld [vmem:[%s2960_s0 + $0x60] sm:$0xff]  ;;  %v104_v27 = vld [vmem:[%s2959_s2 + $0x2c8] sm:$0xff]  ;;  %v418_v29 = vld [vmem:[%s2959_s2 + $0x318] sm:$0x7]  ;;  %v149_v33 = vpack.c.bf16 %v86_v22, %v85_v20 }
  0x24   :  { %1950 = vmatprep.subr.bf16.mxu1 %v162_v51  ;;  %255 = vmatmul.mubr.bf16.vlgmr.msra.gmra.mrb[0].mxu0 %v192_v53  ;;  %v103_v26 = vld [vmem:[%s2959_s2 + $0x2c0] sm:$0xff]  ;;  %v197_v30 = vpack.c.bf16 %v176_v25, %v169_v24  ;;  %v88_v36 = vld [vmem:[%s2959_s2 + $0x248] sm:$0xff]  ;;  %v191_v38 = vld [vmem:[%s2960_s0 + $0xd8] sm:$0xff]  ;;  %v419_v39 = vpack.c.bf16 %v418_v29, %v418_v29 }
  0x25   :  { %1860 = vmatpush3.bf16.msra.mxu0 %v146_v57  ;;  %262 = vmatprep.mubr.bf16.mxu0 %v200_v1  ;;  %v87_v34 = vld [vmem:[%s2959_s2 + $0x240] sm:$0xff]  ;;  %v158_v35 = vpack.c.bf16 %v104_v27, %v103_v26  ;;  %v105_v40 = vld [vmem:[%s2959_s2 + $0x2d0] sm:$0xff]  ;;  %v106_v41 = vld [vmem:[%s2959_s2 + $0x2d8] sm:$0xff] }
  0x26   :  { %304 = vmatmul.mubr.bf16.vlgmr.msra.gmra.mrb[0].mxu1 %v194_v58  ;;  %1861 = vmatprep.subr.bf16.mxu0 %v155_v60  ;;  %v184_v37 = vld [vmem:[%s2960_s0 + $0xa0] sm:$0xff]  ;;  %v150_v43 = vpack.c.bf16 %v88_v36, %v87_v34  ;;  %v159_v45 = vpack.c.bf16 %v106_v41, %v105_v40  ;;  %v89_v46 = vld [vmem:[%s2959_s2 + $0x250] sm:$0xff]  ;;  %v90_v47 = vld [vmem:[%s2959_s2 + $0x258] sm:$0xff]  ;;  %v436_v48 = vand.u32 %v434_v42, %v419_v39 }
  0x27   :  { %1951 = vmatpush3.bf16.msra.mxu1 %v162_v51  ;;  %311 = vmatprep.mubr.bf16.mxu1 %v202_v2  ;;  %v205_v44 = vpack.c.bf16 %v191_v38, %v184_v37  ;;  %v107_v49 = vld [vmem:[%s2959_s2 + $0x2e0] sm:$0xff]  ;;  %v108_v50 = vld [vmem:[%s2959_s2 + $0x2e8] sm:$0xff]  ;;  %v151_v51 = vpack.c.bf16 %v90_v47, %v89_v46  ;;  %v109_v55 = vld [vmem:[%s2959_s2 + $0x2f0] sm:$0xff] }
  0x28   :  { %2151 = vmatprep.subr.msk.bf16.mxu1 %vm218_vm0, %v163_v3  ;;  %v91_v52 = vld [vmem:[%s2959_s2 + $0x260] sm:$0xff]  ;;  %v160_v53 = vpack.c.bf16 %v108_v50, %v107_v49  ;;  %v92_v54 = vld [vmem:[%s2959_s2 + $0x268] sm:$0xff]  ;;  %v110_v57 = vld [vmem:[%s2959_s2 + $0x2f8] sm:$0xff] }
  0x29   :  { %1862 = vmatpush3.bf16.msra.mxu0 %v147_v5  ;;  %v420_v56 = vld [vmem:[%s2961_s1] sm:$0xff]  ;;  %v479_v59 = vld [vmem:[%s2959_s2 + $0x328] sm:$0xff]  ;;  %v152_v60 = vpack.c.bf16 %v92_v54, %v91_v52  ;;  %v161_v62 = vpack.c.bf16 %v110_v57, %v109_v55  ;;  %v93_v63 = vld [vmem:[%s2959_s2 + $0x270] sm:$0xff] }
  0x2a   :  { %1863 = vmatprep.subr.bf16.mxu0 %v156_v9  ;;  %v478_v58 = vld [vmem:[%s2959_s2 + $0x320] sm:$0xff]  ;;  %v421_v61 = vpack.c.bf16 %v420_v56, %v420_v56  ;;  %v94_v0 = vld [vmem:[%s2959_s2 + $0x278] sm:$0xff]  ;;  %v480_v2 = vld [vmem:[%s2959_s2 + $0x330] sm:$0xff] }
  0x2b   :  { %1953 = vmatpush3.bf16.msra.mxu1 %v220_v14  ;;  %v2651_v1 = vpack.c.bf16 %v479_v59, %v478_v58  ;;  %v481_v3 = vld [vmem:[%s2959_s2 + $0x338] sm:$0xff]  ;;  %v153_v4 = vpack.c.bf16 %v94_v0, %v93_v63  ;;  %v168_v5 = vld [vmem:[%s2960_s0 + $0x20] sm:$0xff]  ;;  %v190_v9 = vld [vmem:[%s2960_s0 + $0xd0] sm:$0xff] }
  0x2c   :  { %1958 = vmatprep.subr.bf16.mxu1 %v2239_v28  ;;  %263 = vmatmul.mubr.bf16.gmra.mrb[4].mxu0 %v199_v17  ;;  %v175_v6 = vld [vmem:[%s2960_s0 + $0x58] sm:$0xff]  ;;  %v2666_v7 = vpack.c.bf16 %v481_v3, %v480_v2  ;;  %v182_v13 = vld [vmem:[%s2960_s0 + $0x90] sm:$0xff]  ;;  %v189_v14 = vld [vmem:[%s2960_s0 + $0xc8] sm:$0xff] }
  0x2d   :  { %1864 = vmatpush3.bf16.msra.mxu0 %v148_v18  ;;  %352 = vmatprep.mubr.bf16.mxu0 %v197_v30  ;;  %v183_v8 = vld [vmem:[%s2960_s0 + $0x98] sm:$0xff]  ;;  %v196_v10 = vpack.c.bf16 %v175_v6, %v168_v5  ;;  %v203_v15 = vpack.c.bf16 %v189_v14, %v182_v13  ;;  %v1765_v17 = vld [vmem:[%s2959_s2 + $0x380] ss:$0 sm:$0xff]  ;;  %s2243_s0 = smov 32  }
  0x2e   :  { %312 = vmatmul.mubr.bf16.gmra.mrb[4].mxu1 %v201_v19  ;;  %1865 = vmatprep.subr.bf16.mxu0 %v157_v21  ;;  %v204_v11 = vpack.c.bf16 %v190_v9, %v183_v8 }
  0x2f   :  { %1954 = vmatprep.mubr.msk.bf16.mxu1 %vm211_vm2, %v198_v23 }
  0x31   :  { %1866 = vmatpush3.bf16.msra.mxu0 %v149_v33 }
  0x32   :  { %1867 = vmatprep.subr.bf16.mxu0 %v158_v35 }
  0x35   :  { %1868 = vmatpush3.bf16.msra.mxu0 %v150_v43 }
  0x36   :  { %1955 = vmatmul.mubr.msk.bf16.vlgmr.msra.gmra.mrb[8].mxu1 %vm211_vm2, %v205_v44  ;;  %1869 = vmatprep.subr.bf16.mxu0 %v159_v45 }
  0x37   :  { %1959 = vmatpush3.bf16.msra.mxu1 %v436_v48  ;;  %1960 = vmatprep.mubr.msk.bf16.mxu1 %vm2241_vm4, %v2239_v28 }
  0x38   :  { %1964 = vmatprep.subr.bf16.mxu1 %v2239_v28 }
  0x39   :  { %1870 = vmatpush3.bf16.msra.mxu0 %v151_v51 }
  0x3a   :  { %1871 = vmatprep.subr.bf16.mxu0 %v160_v53 }
  0x3d   :  { %1872 = vmatpush3.bf16.msra.mxu0 %v152_v60 }
  0x3e   :  { %1961 = vmatmul.mubr.msk.bf16.vlgmr.msra.gmra.mrb[12].mxu1 %vm427_vm5, %v421_v61  ;;  %1873 = vmatprep.subr.bf16.mxu0 %v161_v62 }
  0x3f   :  { %1965 = vmatpush3.bf16.msra.mxu1 %v2651_v1  ;;  %1968 = vmatprep.mubr.msk.bf16.mxu1 %vm2241_vm4, %v2239_v28 }
  0x40   :  { %1966 = vmatprep.subr.bf16.mxu1 %v2239_v28 }
  0x41   :  { %1874 = vmatpush3.bf16.msra.mxu0 %v153_v4 }
  0x42   :  { %1988 = vmatprep.subr.bf16.mxu0 %v2239_v28 }
  0x43   :  { %1967 = vmatpush3.bf16.msra.mxu1 %v2666_v7 }
  0x44   :  { %1972 = vmatprep.subr.bf16.mxu1 %v2239_v28  ;;  %353 = vmatmul.mubr.bf16.vlgmr.msra.gmra.mrb[8].mxu0 %v196_v10 }
  0x45   :  { %360 = vmatprep.mubr.bf16.mxu0 %v204_v11  ;;  %1989 = vmatpush3.bf16.msra.mxu0 %v2651_v1 }
  0x46   :  { %1969 = vmatmul.mubr.bf16.vlgmr.msra.gmra.mrb[16].mxu1 %v2242_v12  ;;  %1990 = vmatprep.subr.bf16.mxu0 %v2239_v28 }
  0x47   :  { %1976 = vmatprep.mubr.msk.bf16.mxu1 %vm2241_vm4, %v2239_v28 }
  0x49   :  { %1991 = vmatpush3.bf16.msra.mxu0 %v2666_v7 }
  0x4a   :  { %1996 = vmatprep.subr.bf16.mxu0 %v2239_v28 }
  0x4c   :  { %361 = vmatmul.mubr.bf16.gmra.mrb[12].mxu0 %v203_v15 }
  0x4d   :  { %1992 = vmatprep.mubr.msk.bf16.mxu0 %vm2241_vm4, %v2239_v28 }
  0xf7   :  { %v1819_v16 = vpop.f32.mrb[0].mxu0 }
  0xf8   :  { %v1820_v18 = vpop.f32.mrb[1].mxu0 }
  0xf9   :  { %v1847_v19 = vpop.f32.mrb[0].mxu1  ;;  %v1821_v20 = vadd.f32 %v1820_v18, %v1819_v16  ;;  %v1822_v21 = vpop.f32.mrb[2].mxu0 }
  0xfa   :  { %v1848_v22 = vpop.f32.mrb[1].mxu1  ;;  %v1823_v23 = vpop.f32.mrb[3].mxu0 }
  0xfb   :  { %v1849_v24 = vadd.f32 %v1848_v22, %v1847_v19  ;;  %v1850_v25 = vpop.f32.mrb[2].mxu1  ;;  %v257_v26 = vadd.f32 %v1821_v20, %v1765_v17  ;;  %v1824_v27 = vadd.f32 %v1823_v23, %v1822_v21 }
  0xfc   :  { %v1851_v29 = vpop.f32.mrb[3].mxu1 }
  0xfd   :  { %v1852_v30 = vadd.f32 %v1851_v29, %v1850_v25  ;;  %v260_v31 = vadd.f32 %v1824_v27, %v1765_v17  ;;  %v306_v32 = vadd.f32 %v1849_v24, %v257_v26  ;;  %v484_v29 = vld [vmem:[%s2959_s2 + $0x340] sm:$0xff] }
  0xff   :  { %v309_v33 = vadd.f32 %v1852_v30, %v260_v31  ;;  %v1825_v34 = vpop.f32.mrb[4].mxu0  ;;  %v485_v30 = vld [vmem:[%s2959_s2 + $0x348] sm:$0xff]  ;;  %v486_v31 = vld [vmem:[%s2959_s2 + $0x350] sm:$0xff] }
 0x100   :  { %v1826_v35 = vpop.f32.mrb[5].mxu0 }
 0x101   :  { %v1853_v36 = vpop.f32.mrb[4].mxu1  ;;  %v1827_v37 = vadd.f32 %v1826_v35, %v1825_v34  ;;  %v1828_v38 = vpop.f32.mrb[6].mxu0 }
 0x102   :  { %v1854_v39 = vpop.f32.mrb[5].mxu1  ;;  %v1829_v40 = vpop.f32.mrb[7].mxu0 }
 0x103   :  { %v1855_v41 = vadd.f32 %v1854_v39, %v1853_v36  ;;  %v1856_v42 = vpop.f32.mrb[6].mxu1  ;;  %v265_v43 = vadd.f32 %v1827_v37, %v1765_v17  ;;  %v1830_v44 = vadd.f32 %v1829_v40, %v1828_v38  ;;  %v490_v39 = vld [vmem:[%s2959_s2 + $0x360] sm:$0xff]  ;;  %v491_v40 = vld [vmem:[%s2959_s2 + $0x368] sm:$0xff] }
 0x104   :  { %v1857_v45 = vpop.f32.mrb[7].mxu1 }
 0x105   :  { %v1858_v46 = vadd.f32 %v1857_v45, %v1856_v42  ;;  %v268_v47 = vadd.f32 %v1830_v44, %v1765_v17  ;;  %v314_v48 = vadd.f32 %v1855_v41, %v265_v43  ;;  %v2737_v41 = vpack.c.bf16 %v491_v40, %v490_v39  ;;  %v492_v42 = vld [vmem:[%s2959_s2 + $0x370] sm:$0xff]  ;;  %v493_v43 = vld [vmem:[%s2959_s2 + $0x378] sm:$0xff] }
 0x106   :  { %v2748_v45 = vpack.c.bf16 %v493_v43, %v492_v42 }
 0x107   :  { %v317_v49 = vadd.f32 %v1858_v46, %v268_v47 }
 0x109   :  { %v1956_v50 = vpop.f32.mrb[8].mxu1 }
 0x10a   :  { %v403_v51 = vpop.f32.mrb[9].mxu1 }
 0x10b   :  { %v1957_v52 = vpop.f32.mrb[10].mxu1 }
 0x10c   :  { %v406_v53 = vpop.f32.mrb[11].mxu1 }
 0x117   :  { %v1875_v54 = vpop.f32.mrb[8].mxu0 }
 0x118   :  { %v1876_v55 = vpop.f32.mrb[9].mxu0 }
 0x119   :  { %v535_v56 = vpop.f32.mrb[16].mxu1  ;;  %v1877_v57 = vadd.f32 %v1876_v55, %v1875_v54  ;;  %v1878_v58 = vpop.f32.mrb[10].mxu0 }
 0x11a   :  { %v1970_v59 = vpop.f32.mrb[17].mxu1  ;;  %v1879_v60 = vpop.f32.mrb[11].mxu0 }
 0x11b   :  { %v538_v61 = vpop.f32.mrb[18].mxu1  ;;  %v355_v62 = vadd.f32 %v1877_v57, %v306_v32  ;;  %v1880_v63 = vadd.f32 %v1879_v60, %v1878_v58  ;;  %v2718_v32 = vpack.c.bf16 %v485_v30, %v484_v29 }
 0x11c   :  { %v1971_v0 = vpop.f32.mrb[19].mxu1 }
 0x11d   :  { %v358_v2 = vadd.f32 %v1880_v63, %v309_v33  ;;  %v404_v3 = vadd.f32 %v403_v51, %v355_v62  ;;  %v487_v33 = vld [vmem:[%s2959_s2 + $0x358] sm:$0xff]  ;;  %1973 = vmatpush3.bf16.msra.mxu1 %v2718_v32 }
 0x11e   :  { %v2724_v34 = vpack.c.bf16 %v487_v33, %v486_v31  ;;  %1974 = vmatprep.subr.bf16.mxu1 %v2239_v28 }
 0x11f   :  { %v541_v4 = vadd.f32 %v535_v56, %v404_v3  ;;  %v1881_v5 = vpop.f32.mrb[12].mxu0  ;;  %v2698_v6 = vadd.f32 %v406_v53, %v358_v2 }
 0x120   :  { %v1882_v8 = vpop.f32.mrb[13].mxu0 }
 0x121   :  { %2159 = vtanh.f32 %v541_v4  ;;  %v1883_v9 = vadd.f32 %v1882_v8, %v1881_v5  ;;  %v1884_v10 = vpop.f32.mrb[14].mxu0  ;;  %v1770_v19 = vmul.f32 -1.442695, %v541_v4  ;;  %1975 = vmatpush3.bf16.msra.mxu1 %v2724_v34 }
 0x122   :  { %v1885_v11 = vpop.f32.mrb[15].mxu0  ;;  %1980 = vmatprep.subr.bf16.mxu1 %v2239_v28 }
 0x123   :  { %v363_v13 = vadd.f32 %v1883_v9, %v314_v48  ;;  %v1886_v14 = vadd.f32 %v1885_v11, %v1884_v10  ;;  %2161 = vpow2.f32 %v1770_v19 }
 0x125   :  { %v366_v15 = vadd.f32 %v1886_v14, %v317_v49  ;;  %v2700_v16 = vadd.f32 %v1956_v50, %v363_v13 }
 0x127   :  { %v2702_v17 = vadd.f32 %v1957_v52, %v366_v15 }
 0x12b   :  { %v2160_v18 = vpop.eup %2159 }
 0x12c   :  { %551 = vrot.lane.b32.xlu0 %v2160_v18, %s2243_s0 }
 0x12d   :  { %v2162_v20 = vpop.eup %2161 }
 0x12e   :  { %v545_v21 = vadd.f32 1.0, %v2162_v20 }
 0x130   :  { %2163 = vrcp.f32 %v545_v21 }
 0x13a   :  { %v2164_v22 = vpop.eup %2163 }
 0x13b   :  { %v549_v25 = vmul.f32 0.0, %v2164_v22 }
 0x19e   :  { %v552_v23 = vpop.permute.xlu0 %551 }
 0x19f   :  { %v554_v24 = vmul.f32 %v2164_v22, %v552_v23 }
 0x1a1   :  { %556 = vrot.lane.b32.xlu0 %v554_v24, %s2243_s0 }
 0x213   :  { %v557_v26 = vpop.permute.xlu0 %556 }
 0x214   :  { %v2706_v27 = vadd.f32 %v557_v26, %v549_v25 }
 0x216   :  { %2165 = vtanh.f32 %v2706_v27 }
 0x220   :  { %v2166_v35 = vpop.eup %2165 }
 0x221   :  { %562 = vrot.lane.b32.xlu1 %v2166_v35, %s2243_s0 }
 0x293   :  { %v563_v36 = vpop.permute.xlu1 %562 }
 0x294   :  { %v565_v37 = vmul.f32 %v2164_v22, %v563_v36 }
 0x296   :  { %v566_v38 = vpack.c.bf16 %v565_v37, %v565_v37 }
 0x298   :  { %568 = vrot.lane.b32.xlu1 %v566_v38, %s2244_s16 }
 0x30a   :  { %v569_v44 = vpop.permute.xlu1 %568 }
 0x30b   :  { %1977 = vmatmul.mubr.msk.bf16.vlgmr.msra.gmra.mrb[20].mxu1 %vm497_vm6, %v569_v44  ;;  %1993 = vmatmul.mubr.msk.bf16.vlgmr.msra.gmra.mrb[16].mxu0 %vm497_vm6, %v569_v44 }
 0x30c   :  { %1981 = vmatpush3.bf16.msra.mxu1 %v2737_v41  ;;  %1984 = vmatprep.mubr.msk.bf16.mxu1 %vm2241_vm4, %v2239_v28 }
 0x30d   :  { %1982 = vmatprep.subr.bf16.mxu1 %v2239_v28  ;;  %1997 = vmatpush3.bf16.msra.mxu0 %v2718_v32 }
 0x30e   :  { %1998 = vmatprep.subr.bf16.mxu0 %v2239_v28  ;;  %2000 = vmatprep.mubr.msk.bf16.mxu0 %vm2241_vm4, %v2239_v28 }
 0x310   :  { %1983 = vmatpush3.bf16.msra.mxu1 %v2748_v45 }
 0x311   :  { %2012 = vmatprep.subr.bf16.mxu1 %v2239_v28  ;;  %1999 = vmatpush3.bf16.msra.mxu0 %v2724_v34 }
 0x312   :  { %2004 = vmatprep.subr.bf16.mxu0 %v2239_v28 }
 0x317   :  { %1985 = vmatmul.mubr.bf16.vlgmr.msra.gmra.mrb[20].mxu1 %v2242_v12  ;;  %v2772_v12 = vld [vmem:[%s2959_s2 + $0x382] ss:$0 sm:$0xff] }
 0x318   :  { %2013 = vmatpush3.bf16.msra.mxu1 %v2651_v1  ;;  %2016 = vmatprep.mubr.msk.bf16.mxu1 %vm2241_vm4, %v2239_v28 }
 0x319   :  { %2014 = vmatprep.subr.bf16.mxu1 %v2239_v28 }
 0x31c   :  { %2015 = vmatpush3.bf16.msra.mxu1 %v2666_v7 }
 0x31d   :  { %2020 = vmatprep.subr.bf16.mxu1 %v2239_v28 }
 0x3de   :  { %v718_v46 = vpop.f32.mrb[16].mxu0 }
 0x3df   :  { %v724_v47 = vadd.f32 %v718_v46, %v2698_v6  ;;  %v1994_v48 = vpop.f32.mrb[17].mxu0 }
 0x3e0   :  { %v721_v49 = vpop.f32.mrb[18].mxu0 }
 0x3e1   :  { %2167 = vtanh.f32 %v724_v47  ;;  %v1995_v50 = vpop.f32.mrb[19].mxu0  ;;  %v1775_v58 = vmul.f32 -1.442695, %v724_v47 }
 0x3ea   :  { %v652_v51 = vpop.f32.mrb[20].mxu1 }
 0x3eb   :  { %v2168_v52 = vpop.eup %2167  ;;  %v2122_v53 = vadd.f32 %v2772_v12, %v652_v51  ;;  %v1986_v54 = vpop.f32.mrb[21].mxu1 }
 0x3ec   :  { %734 = vrot.lane.b32.xlu0 %v2168_v52, %s2243_s0  ;;  %v655_v55 = vpop.f32.mrb[22].mxu1 }
 0x3ed   :  { %2169 = vtanh.f32 %v2122_v53  ;;  %v1987_v56 = vpop.f32.mrb[23].mxu1  ;;  %v1773_v59 = vmul.f32 -1.442695, %v2122_v53 }
 0x3ee   :  { %2171 = vpow2.f32 %v1775_v58 }
 0x3ef   :  { %2173 = vpow2.f32 %v1773_v59 }
 0x3f7   :  { %v2170_v57 = vpop.eup %2169 }
 0x3f8   :  { %668 = vrot.lane.b32.xlu1 %v2170_v57, %s2243_s0  ;;  %v2172_v60 = vpop.eup %2171 }
 0x3f9   :  { %v728_v61 = vadd.f32 1.0, %v2172_v60  ;;  %v2174_v62 = vpop.eup %2173 }
 0x3fa   :  { %v662_v63 = vadd.f32 1.0, %v2174_v62 }
 0x3fb   :  { %2175 = vrcp.f32 %v728_v61 }
 0x3fc   :  { %2177 = vrcp.f32 %v662_v63 }
 0x405   :  { %v2176_v0 = vpop.eup %2175 }
 0x406   :  { %v2178_v4 = vpop.eup %2177  ;;  %v732_v8 = vmul.f32 %v2176_v0, %v2706_v27 }
 0x407   :  { %v666_v11 = vmul.f32 0.0, %v2178_v4 }
 0x45e   :  { %v735_v2 = vpop.permute.xlu0 %734 }
 0x45f   :  { %v737_v3 = vmul.f32 %v2176_v0, %v735_v2 }
 0x461   :  { %739 = vrot.lane.b32.xlu0 %v737_v3, %s2243_s0 }
 0x46a   :  { %v669_v5 = vpop.permute.xlu1 %668 }
 0x46b   :  { %v671_v6 = vmul.f32 %v2178_v4, %v669_v5 }
 0x46d   :  { %673 = vrot.lane.b32.xlu1 %v671_v6, %s2243_s0 }
 0x4d3   :  { %v740_v9 = vpop.permute.xlu0 %739 }
 0x4d4   :  { %v2780_v10 = vadd.f32 %v740_v9, %v732_v8 }
 0x4d6   :  { %2179 = vtanh.f32 %v2780_v10 }
 0x4df   :  { %v674_v13 = vpop.permute.xlu1 %673 }
 0x4e0   :  { %v2180_v14 = vpop.eup %2179  ;;  %v2783_v15 = vadd.f32 %v674_v13, %v666_v11 }
 0x4e1   :  { %745 = vrot.lane.b32.xlu0 %v2180_v14, %s2243_s0 }
 0x4e2   :  { %2181 = vtanh.f32 %v2783_v15 }
 0x4ec   :  { %v2182_v18 = vpop.eup %2181 }
 0x4ed   :  { %679 = vrot.lane.b32.xlu1 %v2182_v18, %s2243_s0 }
 0x553   :  { %v746_v19 = vpop.permute.xlu0 %745 }
 0x554   :  { %v748_v20 = vmul.f32 %v2176_v0, %v746_v19 }
 0x556   :  { %v749_v21 = vpack.c.bf16 %v748_v20, %v748_v20 }
 0x558   :  { %751 = vrot.lane.b32.xlu0 %v749_v21, %s2244_s16 }
 0x55f   :  { %v680_v22 = vpop.permute.xlu1 %679 }
 0x560   :  { %v682_v23 = vmul.f32 %v2178_v4, %v680_v22 }
 0x562   :  { %v683_v24 = vpack.c.bf16 %v682_v23, %v682_v23 }
 0x564   :  { %798 = vrot.lane.b32.xlu1 %v683_v24, %s2244_s16 }
 0x5ca   :  { %v752_v25 = vpop.permute.xlu0 %751 }
 0x5cb   :  { %2001 = vmatmul.mubr.msk.bf16.vlgmr.msra.gmra.mrb[20].mxu0 %vm497_vm6, %v752_v25  ;;  %2017 = vmatmul.mubr.msk.bf16.vlgmr.msra.gmra.mrb[24].mxu1 %vm497_vm6, %v752_v25 }
 0x5cc   :  { %2005 = vmatpush3.bf16.msra.mxu0 %v2737_v41  ;;  %2008 = vmatprep.mubr.msk.bf16.mxu0 %vm2241_vm4, %v2239_v28 }
 0x5cd   :  { %2006 = vmatprep.subr.bf16.mxu0 %v2239_v28  ;;  %2021 = vmatpush3.bf16.msra.mxu1 %v2718_v32 }
 0x5ce   :  { %2022 = vmatprep.subr.bf16.mxu1 %v2239_v28  ;;  %2024 = vmatprep.mubr.msk.bf16.mxu1 %vm2241_vm4, %v2239_v28 }
 0x5d0   :  { %2007 = vmatpush3.bf16.msra.mxu0 %v2748_v45 }
 0x5d1   :  { %2036 = vmatprep.subr.bf16.mxu0 %v2239_v28  ;;  %2023 = vmatpush3.bf16.msra.mxu1 %v2724_v34 }
 0x5d2   :  { %2028 = vmatprep.subr.bf16.mxu1 %v2239_v28 }
 0x5d6   :  { %v799_v26 = vpop.permute.xlu1 %798 }
 0x5d7   :  { %2009 = vmatmul.mubr.msk.bf16.vlgmr.msra.gmra.mrb[20].mxu0 %vm497_vm6, %v799_v26 }
 0x5d8   :  { %2037 = vmatpush3.bf16.msra.mxu0 %v2651_v1  ;;  %2040 = vmatprep.mubr.msk.bf16.mxu0 %vm2241_vm4, %v2239_v28 }
 0x5d9   :  { %2038 = vmatprep.subr.bf16.mxu0 %v2239_v28 }
 0x5dc   :  { %2039 = vmatpush3.bf16.msra.mxu0 %v2666_v7 }
 0x5dd   :  { %2044 = vmatprep.subr.bf16.mxu0 %v2239_v28 }
 0x69e   :  { %v903_v27 = vpop.f32.mrb[24].mxu1 }
 0x69f   :  { %v909_v29 = vadd.f32 %v903_v27, %v2700_v16  ;;  %v2018_v30 = vpop.f32.mrb[25].mxu1 }
 0x6a0   :  { %v906_v31 = vpop.f32.mrb[26].mxu1 }
 0x6a1   :  { %2183 = vtanh.f32 %v909_v29  ;;  %v2019_v33 = vpop.f32.mrb[27].mxu1  ;;  %v1780_v43 = vmul.f32 -1.442695, %v909_v29 }
 0x6aa   :  { %v837_v35 = vpop.f32.mrb[20].mxu0 }
 0x6ab   :  { %v2184_v36 = vpop.eup %2183  ;;  %v2123_v37 = vadd.f32 %v2772_v12, %v837_v35  ;;  %v2010_v38 = vpop.f32.mrb[21].mxu0 }
 0x6ac   :  { %v840_v39 = vpop.f32.mrb[22].mxu0  ;;  %919 = vrot.lane.b32.xlu0 %v2184_v36, %s2243_s0 }
 0x6ad   :  { %2185 = vtanh.f32 %v2123_v37  ;;  %v2011_v40 = vpop.f32.mrb[23].mxu0  ;;  %v1778_v16 = vmul.f32 -1.442695, %v2123_v37 }
 0x6ae   :  { %2187 = vpow2.f32 %v1780_v43 }
 0x6af   :  { %2189 = vpow2.f32 %v1778_v16 }
 0x6b7   :  { %v2186_v42 = vpop.eup %2185 }
 0x6b8   :  { %853 = vrot.lane.b32.xlu1 %v2186_v42, %s2243_s0  ;;  %v2188_v44 = vpop.eup %2187 }
 0x6b9   :  { %v913_v46 = vadd.f32 1.0, %v2188_v44  ;;  %v2190_v47 = vpop.eup %2189 }
 0x6ba   :  { %v847_v48 = vadd.f32 1.0, %v2190_v47 }
 0x6bb   :  { %2191 = vrcp.f32 %v913_v46 }
 0x6bc   :  { %2193 = vrcp.f32 %v847_v48 }
 0x6c5   :  { %v2192_v49 = vpop.eup %2191 }
 0x6c6   :  { %v2194_v52 = vpop.eup %2193  ;;  %v917_v55 = vmul.f32 %v2192_v49, %v2780_v10 }
 0x6c7   :  { %v851_v58 = vmul.f32 %v2194_v52, %v2783_v15 }
 0x71e   :  { %v920_v50 = vpop.permute.xlu0 %919 }
 0x71f   :  { %v922_v51 = vmul.f32 %v2192_v49, %v920_v50 }
 0x721   :  { %924 = vrot.lane.b32.xlu0 %v922_v51, %s2243_s0 }
 0x72a   :  { %v854_v53 = vpop.permute.xlu1 %853 }
 0x72b   :  { %v856_v54 = vmul.f32 %v2194_v52, %v854_v53 }
 0x72d   :  { %858 = vrot.lane.b32.xlu1 %v856_v54, %s2243_s0 }
 0x793   :  { %v925_v56 = vpop.permute.xlu0 %924 }
 0x794   :  { %v2818_v57 = vadd.f32 %v925_v56, %v917_v55 }
 0x796   :  { %2195 = vtanh.f32 %v2818_v57 }
 0x79f   :  { %v859_v59 = vpop.permute.xlu1 %858 }
 0x7a0   :  { %v2196_v60 = vpop.eup %2195  ;;  %v2822_v61 = vadd.f32 %v859_v59, %v851_v58 }
 0x7a1   :  { %930 = vrot.lane.b32.xlu0 %v2196_v60, %s2243_s0 }
 0x7a2   :  { %2197 = vtanh.f32 %v2822_v61 }
 0x7ac   :  { %v2198_v62 = vpop.eup %2197 }
 0x7ad   :  { %864 = vrot.lane.b32.xlu1 %v2198_v62, %s2243_s0 }
 0x813   :  { %v931_v63 = vpop.permute.xlu0 %930 }
 0x814   :  { %v933_v0 = vmul.f32 %v2192_v49, %v931_v63 }
 0x816   :  { %v934_v2 = vpack.c.bf16 %v933_v0, %v933_v0 }
 0x818   :  { %936 = vrot.lane.b32.xlu0 %v934_v2, %s2244_s16 }
 0x81f   :  { %v865_v3 = vpop.permute.xlu1 %864 }
 0x820   :  { %v867_v4 = vmul.f32 %v2194_v52, %v865_v3 }
 0x822   :  { %v868_v5 = vpack.c.bf16 %v867_v4, %v867_v4 }
 0x824   :  { %983 = vrot.lane.b32.xlu1 %v868_v5, %s2244_s16 }
 0x88a   :  { %v937_v6 = vpop.permute.xlu0 %936 }
 0x88b   :  { %2025 = vmatmul.mubr.msk.bf16.vlgmr.msra.gmra.mrb[28].mxu1 %vm497_vm6, %v937_v6  ;;  %2041 = vmatmul.mubr.msk.bf16.vlgmr.msra.gmra.mrb[24].mxu0 %vm497_vm6, %v937_v6 }
 0x88c   :  { %2029 = vmatpush3.bf16.msra.mxu1 %v2737_v41  ;;  %2032 = vmatprep.mubr.msk.bf16.mxu1 %vm2241_vm4, %v2239_v28 }
 0x88d   :  { %2030 = vmatprep.subr.bf16.mxu1 %v2239_v28  ;;  %2045 = vmatpush3.bf16.msra.mxu0 %v2718_v32 }
 0x88e   :  { %2046 = vmatprep.subr.bf16.mxu0 %v2239_v28  ;;  %2048 = vmatprep.mubr.msk.bf16.mxu0 %vm2241_vm4, %v2239_v28 }
 0x890   :  { %2031 = vmatpush3.bf16.msra.mxu1 %v2748_v45 }
 0x891   :  { %2060 = vmatprep.subr.bf16.mxu1 %v2239_v28  ;;  %2047 = vmatpush3.bf16.msra.mxu0 %v2724_v34 }
 0x892   :  { %2052 = vmatprep.subr.bf16.mxu0 %v2239_v28 }
 0x896   :  { %v984_v8 = vpop.permute.xlu1 %983 }
 0x897   :  { %2033 = vmatmul.mubr.msk.bf16.vlgmr.msra.gmra.mrb[28].mxu1 %vm497_vm6, %v984_v8 }
 0x898   :  { %2061 = vmatpush3.bf16.msra.mxu1 %v2651_v1  ;;  %2064 = vmatprep.mubr.msk.bf16.mxu1 %vm2241_vm4, %v2239_v28 }
 0x899   :  { %2062 = vmatprep.subr.bf16.mxu1 %v2239_v28 }
 0x89c   :  { %2063 = vmatpush3.bf16.msra.mxu1 %v2666_v7 }
 0x89d   :  { %2068 = vmatprep.subr.bf16.mxu1 %v2239_v28 }
 0x95e   :  { %v1088_v9 = vpop.f32.mrb[24].mxu0 }
 0x95f   :  { %v1094_v10 = vadd.f32 %v1088_v9, %v2702_v17  ;;  %v2042_v11 = vpop.f32.mrb[25].mxu0 }
 0x960   :  { %v1091_v13 = vpop.f32.mrb[26].mxu0 }
 0x961   :  { %2199 = vtanh.f32 %v1094_v10  ;;  %v2043_v14 = vpop.f32.mrb[27].mxu0  ;;  %v1785_v22 = vmul.f32 -1.442695, %v1094_v10 }
 0x96a   :  { %v1022_v15 = vpop.f32.mrb[28].mxu1 }
 0x96b   :  { %v2200_v18 = vpop.eup %2199  ;;  %v2124_v1 = vadd.f32 %v2772_v12, %v1022_v15  ;;  %v2034_v19 = vpop.f32.mrb[29].mxu1 }
 0x96c   :  { %1104 = vrot.lane.b32.xlu0 %v2200_v18, %s2243_s0  ;;  %v1025_v20 = vpop.f32.mrb[30].mxu1 }
 0x96d   :  { %2201 = vtanh.f32 %v2124_v1  ;;  %v2035_v21 = vpop.f32.mrb[31].mxu1  ;;  %v1783_v17 = vmul.f32 -1.442695, %v2124_v1 }
 0x96e   :  { %2203 = vpow2.f32 %v1785_v22 }
 0x96f   :  { %2205 = vpow2.f32 %v1783_v17 }
 0x977   :  { %v2202_v7 = vpop.eup %2201 }
 0x978   :  { %1038 = vrot.lane.b32.xlu1 %v2202_v7, %s2243_s0  ;;  %v2204_v23 = vpop.eup %2203 }
 0x979   :  { %v1098_v24 = vadd.f32 1.0, %v2204_v23  ;;  %v2206_v25 = vpop.eup %2205 }
 0x97a   :  { %v1032_v26 = vadd.f32 1.0, %v2206_v25 }
 0x97b   :  { %2207 = vrcp.f32 %v1098_v24 }
 0x97c   :  { %2209 = vrcp.f32 %v1032_v26 }
 0x985   :  { %v2208_v27 = vpop.eup %2207 }
 0x986   :  { %v2210_v31 = vpop.eup %2209  ;;  %v1102_v36 = vmul.f32 %v2208_v27, %v2818_v57 }
 0x987   :  { %v1036_v39 = vmul.f32 %v2210_v31, %v2822_v61 }
 0x9de   :  { %v1105_v29 = vpop.permute.xlu0 %1104 }
 0x9df   :  { %v1107_v30 = vmul.f32 %v2208_v27, %v1105_v29 }
 0x9e1   :  { %1109 = vrot.lane.b32.xlu0 %v1107_v30, %s2243_s0 }
 0x9ea   :  { %v1039_v33 = vpop.permute.xlu1 %1038 }
 0x9eb   :  { %v1041_v35 = vmul.f32 %v2210_v31, %v1039_v33 }
 0x9ed   :  { %1043 = vrot.lane.b32.xlu1 %v1041_v35, %s2243_s0 }
 0xa53   :  { %v1110_v37 = vpop.permute.xlu0 %1109 }
 0xa54   :  { %v2857_v38 = vadd.f32 %v1110_v37, %v1102_v36 }
 0xa56   :  { %2211 = vtanh.f32 %v2857_v38 }
 0xa5f   :  { %v1044_v40 = vpop.permute.xlu1 %1043 }
 0xa60   :  { %v2212_v42 = vpop.eup %2211  ;;  %v2861_v43 = vadd.f32 %v1044_v40, %v1036_v39 }
 0xa61   :  { %1115 = vrot.lane.b32.xlu0 %v2212_v42, %s2243_s0 }
 0xa62   :  { %2213 = vtanh.f32 %v2861_v43 }
 0xa6c   :  { %v2214_v16 = vpop.eup %2213 }
 0xa6d   :  { %1049 = vrot.lane.b32.xlu1 %v2214_v16, %s2243_s0 }
 0xad3   :  { %v1116_v44 = vpop.permute.xlu0 %1115 }
 0xad4   :  { %v1118_v46 = vmul.f32 %v2208_v27, %v1116_v44 }
 0xad6   :  { %v1119_v47 = vpack.c.bf16 %v1118_v46, %v1118_v46  ;;  %v1423_v46 = vld [vmem:[%s2959_s2 + $0x388] sm:$0xff] }
 0xad8   :  { %1121 = vrot.lane.b32.xlu0 %v1119_v47, %s2244_s16  ;;  %v1424_v47 = vld [vmem:[%s2959_s2 + $0x390] sm:$0xff] }
 0xadf   :  { %v1050_v48 = vpop.permute.xlu1 %1049 }
 0xae0   :  { %v1052_v49 = vmul.f32 %v2210_v31, %v1050_v48  ;;  %v1425_v48 = vld [vmem:[%s2959_s2 + $0x398] sm:$0xff] }
 0xae2   :  { %v1053_v50 = vpack.c.bf16 %v1052_v49, %v1052_v49  ;;  %v2245_v49 = vmov 0.0|0.0  }
 0xae4   :  { %1168 = vrot.lane.b32.xlu1 %v1053_v50, %s2244_s16  ;;  %v2113_v50 = vpack.c.bf16 %v1424_v47, %v1423_v46 }
 0xb4a   :  { %v1122_v51 = vpop.permute.xlu0 %1121 }
 0xb4b   :  { %2049 = vmatmul.mubr.msk.bf16.vlgmr.msra.gmra.mrb[28].mxu0 %vm497_vm6, %v1122_v51  ;;  %2065 = vmatmul.mubr.msk.bf16.vlgmr.msra.gmra.mrb[12].mxu1 %vm497_vm6, %v1122_v51  ;;  %v1426_v51 = vld [vmem:[%s2959_s2 + $0x3a0] sm:$0xff] }
 0xb4c   :  { %2053 = vmatpush3.bf16.msra.mxu0 %v2737_v41  ;;  %2056 = vmatprep.mubr.msk.bf16.mxu0 %vm2241_vm4, %v2239_v28 }
 0xb4d   :  { %2054 = vmatprep.subr.bf16.mxu0 %v2239_v28  ;;  %2069 = vmatpush3.bf16.msra.mxu1 %v2718_v32  ;;  %v1768_v32 = vld [vmem:[%s2959_s2 + $0x381] ss:$0 sm:$0xff] }
 0xb4e   :  { %2070 = vmatprep.subr.bf16.mxu1 %v2239_v28  ;;  %2072 = vmatprep.mubr.msk.bf16.mxu1 %vm2241_vm4, %v2239_v28 }
 0xb50   :  { %2055 = vmatpush3.bf16.msra.mxu0 %v2748_v45 }
 0xb51   :  { %2071 = vmatpush3.bf16.msra.mxu1 %v2724_v34  ;;  %2112 = vmatprep.subr.bf16.mxu0 %v2245_v49 }
 0xb52   :  { %2076 = vmatprep.subr.bf16.mxu1 %v2239_v28 }
 0xb56   :  { %v1169_v52 = vpop.permute.xlu1 %1168 }
 0xb57   :  { %2057 = vmatmul.mubr.msk.bf16.vlgmr.msra.gmra.mrb[28].mxu0 %vm497_vm6, %v1169_v52  ;;  %v2116_v52 = vpack.c.bf16 %v1426_v51, %v1425_v48 }
 0xb58   :  { %2092 = vmatprep.mubr.msk.f32.mxu0 %vm2241_vm4, %v2239_v28  ;;  %2114 = vmatpush3.bf16.msra.mxu0 %v2113_v50 }
 0xb59   :  { %2115 = vmatprep.subr.bf16.mxu0 %v2245_v49 }
 0xb5c   :  { %2117 = vmatpush3.bf16.msra.mxu0 %v2116_v52 }
 0xb5d   :  { %2118 = vmatprep.subr.bf16.mxu0 %v2245_v49 }
 0xc1e   :  { %v1273_v53 = vpop.f32.mrb[12].mxu1 }
 0xc1f   :  { %v2121_v54 = vadd.f32 %v1768_v32, %v1273_v53  ;;  %v2066_v55 = vpop.f32.mrb[13].mxu1 }
 0xc20   :  { %v1276_v56 = vpop.f32.mrb[14].mxu1 }
 0xc21   :  { %2215 = vtanh.f32 %v2121_v54  ;;  %v2067_v57 = vpop.f32.mrb[15].mxu1  ;;  %v1790_v0 = vmul.f32 -1.442695, %v2121_v54  ;;  %v1428_v56 = vld [vmem:[%s2959_s2 + $0x3a8] sm:$0xff] }
 0xc22   :  { %v1429_v57 = vld [vmem:[%s2959_s2 + $0x3b0] sm:$0xff] }
 0xc2a   :  { %v1207_v58 = vpop.f32.mrb[28].mxu0 }
 0xc2b   :  { %v2216_v34 = vpop.eup %2215  ;;  %v2125_v59 = vadd.f32 %v2772_v12, %v1207_v58  ;;  %v2058_v60 = vpop.f32.mrb[29].mxu0  ;;  %v2119_v58 = vpack.c.bf16 %v1429_v57, %v1428_v56 }
 0xc2c   :  { %v1210_v61 = vpop.f32.mrb[30].mxu0  ;;  %1289 = vrot.lane.b32.xlu0 %v2216_v34, %s2243_s0  ;;  %v1794_v34 = vld [vmem:[%s2959_s2 + $0x383] ss:$0 sm:$0xff] }
 0xc2d   :  { %2217 = vtanh.f32 %v2125_v59  ;;  %v2059_v62 = vpop.f32.mrb[31].mxu0  ;;  %v1788_v2 = vmul.f32 -1.442695, %v2125_v59 }
 0xc2e   :  { %2219 = vpow2.f32 %v1790_v0  ;;  %v1431_v0 = vld [vmem:[%s2959_s2 + $0x3b8] sm:$0xff] }
 0xc2f   :  { %2221 = vpow2.f32 %v1788_v2  ;;  %v1433_v2 = vld [vmem:[%s2959_s2 + $0x3c0] sm:$0xf] }
 0xc37   :  { %v2218_v63 = vpop.eup %2217 }
 0xc38   :  { %1223 = vrot.lane.b32.xlu1 %v2218_v63, %s2243_s0  ;;  %v2220_v3 = vpop.eup %2219 }
 0xc39   :  { %v1283_v4 = vadd.f32 1.0, %v2220_v3  ;;  %v2222_v5 = vpop.eup %2221  ;;  %v1796_v3 = vld [vmem:[%s2959_s2 + $0x384] ss:$0 sm:$0xff] }
 0xc3a   :  { %v1217_v6 = vadd.f32 1.0, %v2222_v5 }
 0xc3b   :  { %2223 = vrcp.f32 %v1283_v4 }
 0xc3c   :  { %2225 = vrcp.f32 %v1217_v6 }
 0xc45   :  { %v2224_v8 = vpop.eup %2223 }
 0xc46   :  { %v2226_v11 = vpop.eup %2225  ;;  %v1287_v15 = vmul.f32 %v2224_v8, %v2857_v38 }
 0xc47   :  { %v1221_v19 = vmul.f32 %v2226_v11, %v2861_v43 }
 0xc9e   :  { %v1290_v9 = vpop.permute.xlu0 %1289 }
 0xc9f   :  { %v1292_v10 = vmul.f32 %v2224_v8, %v1290_v9  ;;  %v1798_v9 = vld [vmem:[%s2959_s2 + $0x385] ss:$0 sm:$0xff] }
 0xca1   :  { %1294 = vrot.lane.b32.xlu0 %v1292_v10, %s2243_s0 }
 0xcaa   :  { %v1224_v13 = vpop.permute.xlu1 %1223 }
 0xcab   :  { %v1226_v14 = vmul.f32 %v2226_v11, %v1224_v13 }
 0xcad   :  { %1228 = vrot.lane.b32.xlu1 %v1226_v14, %s2243_s0 }
 0xd13   :  { %v1295_v18 = vpop.permute.xlu0 %1294 }
 0xd14   :  { %v1297_v1 = vadd.f32 %v1295_v18, %v1287_v15  ;;  %v1800_v18 = vld [vmem:[%s2959_s2 + $0x386] ss:$0 sm:$0xff] }
 0xd16   :  { %2227 = vtanh.f32 %v1297_v1 }
 0xd1f   :  { %v1229_v20 = vpop.permute.xlu1 %1228 }
 0xd20   :  { %v2228_v21 = vpop.eup %2227  ;;  %v1231_v7 = vadd.f32 %v1229_v20, %v1221_v19 }
 0xd21   :  { %1300 = vrot.lane.b32.xlu0 %v2228_v21, %s2243_s0 }
 0xd22   :  { %2229 = vtanh.f32 %v1231_v7 }
 0xd2c   :  { %v2230_v22 = vpop.eup %2229 }
 0xd2d   :  { %1234 = vrot.lane.b32.xlu1 %v2230_v22, %s2243_s0 }
 0xd93   :  { %v1301_v17 = vpop.permute.xlu0 %1300 }
 0xd94   :  { %v1303_v23 = vmul.f32 %v2224_v8, %v1301_v17 }
 0xd96   :  { %v1304_v24 = vpack.c.bf16 %v1303_v23, %v1303_v23 }
 0xd98   :  { %1306 = vrot.lane.b32.xlu0 %v1304_v24, %s2244_s16 }
 0xd9f   :  { %v1235_v25 = vpop.permute.xlu1 %1234 }
 0xda0   :  { %v1237_v26 = vmul.f32 %v2226_v11, %v1235_v25 }
 0xda2   :  { %v1238_v27 = vpack.c.bf16 %v1237_v26, %v1237_v26 }
 0xda4   :  { %1353 = vrot.lane.b32.xlu1 %v1238_v27, %s2244_s16 }
 0xe0a   :  { %v1307_v29 = vpop.permute.xlu0 %1306 }
 0xe0b   :  { %2073 = vmatmul.mubr.msk.bf16.vlgmr.msra.gmra.mrb[32].mxu1 %vm497_vm6, %v1307_v29 }
 0xe0c   :  { %2077 = vmatpush3.bf16.msra.mxu1 %v2737_v41  ;;  %2080 = vmatprep.mubr.msk.bf16.mxu1 %vm2241_vm4, %v2239_v28 }
 0xe0d   :  { %2078 = vmatprep.subr.bf16.mxu1 %v2239_v28 }
 0xe10   :  { %2079 = vmatpush3.bf16.msra.mxu1 %v2748_v45 }
 0xe11   :  { %2107 = vmatprep.subr.mxu1 %v2239_v28 }
 0xe16   :  { %v1354_v30 = vpop.permute.xlu1 %1353 }
 0xe17   :  { %2081 = vmatmul.mubr.msk.bf16.vlgmr.msra.gmra.mrb[32].mxu1 %vm497_vm6, %v1354_v30 }
 0xe18   :  { %2109 = vmatprep.mubr.msk.f32.mxu1 %vm2241_vm4, %v2239_v28  ;;  %2108 = vmatpush3.msk.msra.mxu1 %vm218_vm0, %v1433_v2 }
 0xeea   :  { %v1392_v31 = vpop.f32.mrb[32].mxu1 }
 0xeeb   :  { %v2126_v33 = vadd.f32 %v2772_v12, %v1392_v31  ;;  %v2082_v35 = vpop.f32.mrb[33].mxu1 }
 0xeec   :  { %v1395_v41 = vpop.f32.mrb[34].mxu1 }
 0xeed   :  { %2231 = vtanh.f32 %v2126_v33  ;;  %v2083_v36 = vpop.f32.mrb[35].mxu1  ;;  %v1793_v38 = vmul.f32 -1.442695, %v2126_v33 }
 0xeef   :  { %2233 = vpow2.f32 %v1793_v38 }
 0xef7   :  { %v2232_v37 = vpop.eup %2231 }
 0xef8   :  { %1408 = vrot.lane.b32.xlu0 %v2232_v37, %s2243_s0 }
 0xef9   :  { %v2234_v45 = vpop.eup %2233 }
 0xefa   :  { %v1402_v39 = vadd.f32 1.0, %v2234_v45 }
 0xefc   :  { %2235 = vrcp.f32 %v1402_v39 }
 0xf06   :  { %v2236_v40 = vpop.eup %2235 }
 0xf07   :  { %v1406_v16 = vmul.f32 %v2236_v40, %v1231_v7 }
 0xf6a   :  { %v1409_v42 = vpop.permute.xlu0 %1408 }
 0xf6b   :  { %v1411_v43 = vmul.f32 %v2236_v40, %v1409_v42 }
 0xf6d   :  { %1413 = vrot.lane.b32.xlu1 %v1411_v43, %s2243_s0 }
 0xfdf   :  { %v1414_v44 = vpop.permute.xlu1 %1413 }
 0xfe0   :  { %v1416_v12 = vadd.f32 %v1414_v44, %v1406_v16 }
 0xfe2   :  { %2237 = vtanh.f32 %v1416_v12 }
 0xfec   :  { %v2238_v32 = vpop.eup %2237 }
 0xfed   :  { %1419 = vrot.lane.b32.xlu0 %v2238_v32, %s2243_s0 }
0x105f   :  { %v1420_v53 = vpop.permute.xlu0 %1419 }
0x1060   :  { %v1422_v54 = vmul.f32 %v2236_v40, %v1420_v53 }
0x1062   :  { %1440 = vrot.lane.b32.xlu1 %v1422_v54, %s2244_s16 }
0x10d4   :  { %v1441_v55 = vpop.permute.xlu1 %1440 }
0x10d5   :  { %2093 = vmatmul.mubr.msk.f32.vlgmr.msra.gmra.mrb[32].mxu0 %vm497_vm6, %v1441_v55 }
0x10d6   :  { %2099 = vmatprep.mubr.msk.f32.mxu0 %vm2241_vm4, %v2239_v28  ;;  %2120 = vmatpush3.bf16.msra.mxu0 %v2119_v58 }
0x10d7   :  { %2102 = vmatprep.subr.mxu0 %v2239_v28 }
0x11a8   :  { %v1510_v59 = vpop.f32.mrb[32].mxu0 }
0x11a9   :  { %v1511_v60 = vadd.f32 %v1794_v34, %v1510_v59  ;;  %v2094_v61 = vpop.f32.mrb[33].mxu0 }
0x11ab   :  { %vm1514_vm7 = vcmp.gt.f32.partialorder %v1511_v60, 0.0  ;;  %v1515_v62 = vmul.f32 0.01, %v1511_v60 }
0x11ad   :  { %v1516_v63 = vsel %vm1514_vm7, %v1511_v60, %v1515_v62 }
0x11ae   :  { %2100 = vmatmul.mubr.msk.f32.vlgmr.msra.gmra.mrb[34].mxu0 %vm1521_vm8, %v1516_v63 }
0x11af   :  { %2104 = vmatprep.mubr.msk.f32.mxu0 %vm2241_vm4, %v2239_v28  ;;  %2103 = vmatpush3.msra.mxu0 %v1431_v0 }
0x1281   :  { %v1591_v4 = vpop.f32.mrb[34].mxu0 }
0x1282   :  { %v1592_v5 = vadd.f32 %v1796_v3, %v1591_v4  ;;  %v2101_v6 = vpop.f32.mrb[35].mxu0 }
0x1284   :  { %vm1595_vm9 = vcmp.gt.f32.partialorder %v1592_v5, 0.0  ;;  %v1596_v28 = vmul.f32 0.01, %v1592_v5 }
0x1286   :  { %v1597_v8 = vsel %vm1595_vm9, %v1592_v5, %v1596_v28 }
0x1287   :  { %2105 = vmatmul.mubr.msk.f32.vlgmr.msra.gmra.mrb[36].mxu0 %vm1602_vm10, %v1597_v8 }
0x135a   :  { %v1672_v10 = vpop.f32.mrb[36].mxu0 }
0x135b   :  { %v1673_v11 = vadd.f32 %v1798_v9, %v1672_v10  ;;  %v2106_v13 = vpop.f32.mrb[37].mxu0 }
0x135d   :  { %vm1676_vm11 = vcmp.gt.f32.partialorder %v1673_v11, 0.0  ;;  %v1677_v14 = vmul.f32 0.01, %v1673_v11 }
0x135f   :  { %v1678_v15 = vsel %vm1676_vm11, %v1673_v11, %v1677_v14 }
0x1360   :  { %2110 = vmatmul.mubr.msk.f32.vlgmr.msra.gmra.mrb[36].mxu1 %vm1683_vm12, %v1678_v15 }
0x1433   :  { %v1756_v1 = vpop.f32.mrb[36].mxu1 }
0x1434   :  { %v1757_v19 = vadd.f32 %v1800_v18, %v1756_v1  ;;  %v2111_v20 = vpop.f32.mrb[37].mxu1 }
0x1436   :  { %1760 = vst.msk [vmem:[%s2962_s3] sm:$0xff] %vm1683_vm12, %v1757_v19 }

</bundles_post_ra>
